<compile_context>
chip_gen: v7x
topology: tpu7x:2x2x1
jax: 0.10.0
libtpu: 0.0.40
codegen_flags: <defaults>
</compile_context>

<pallas_src>
import jax
import jax.numpy as jnp
from jax.experimental import pallas as pl
from jax.experimental.pallas import tpu as pltpu

# ----------------------------------------------------------------------------
# Configuration (small shapes consistent with the module defaults)
# ----------------------------------------------------------------------------
B = 2                    # batch
C_PROFILE = 8            # in_channels_profile (divisible by 4)
HIST_LEN = 16            # profile_hist_len
C_CAMPAIGN = 6           # in_channels_campaign
T_CAMPAIGN = 8           # campaign sequence length
C_MEETING = 4            # in_channels_meeting
T_MEETING = 5            # meeting sequence length
OUT_PROFILE = 10         # out_channel_profile
H_CAMPAIGN = 10          # hidden_size_campaign
H_MEETING = 5            # hidden_size_meeting
OUT_CHANNEL = 3          # final output channels
KSIZE = 3                # kernel_size
PAD1 = 2                 # conv1 padding

# Conv1d output lengths (same arithmetic as conv1d_output_len)
LSEG = HIST_LEN + 2 * PAD1               # per-row padded conv segment length (20)
L1 = LSEG - (KSIZE - 1)                  # conv1 out len (18)
L2 = L1 - (2 * KSIZE - 1)                # conv2 out len (13)
L3 = L2 - (KSIZE - 1)                    # conv3 out len (11)
LINEAR_IN = H_CAMPAIGN + H_MEETING + OUT_PROFILE * L3   # 125

CPAD = 8                                 # conv channel rows padded to one sublane tile
W_IN = B * LSEG                          # 40 columns of the batched conv segment
W1 = W_IN - (KSIZE - 1)                  # 38
W2 = W1 - (2 * KSIZE - 1)                # 33
W3 = W2 - (KSIZE - 1)                    # 31

T_GRU = max(T_CAMPAIGN, T_MEETING)       # 8 fused recurrence steps
HT = H_CAMPAIGN + H_MEETING              # 15 fused hidden rows (campaign | meeting)
HTP = 16                                 # fused hidden padded to sublane-friendly 16
ICM = C_CAMPAIGN + C_MEETING             # 10 fused GRU input rows
ICMP = 16                                # padded fused GRU input rows

# ---- static layout / cross-batch-contamination guards (see review) ----------
assert L1 == LSEG - (KSIZE - 1) and L2 == L1 - (2 * KSIZE - 1) and L3 == L2 - (KSIZE - 1)
assert W3 == (B - 1) * LSEG + L3         # last batch's valid cols fit exactly
assert L3 <= LSEG                        # zero-padded head weights cover garbage tail
assert HT <= HTP and ICM <= ICMP and C_PROFILE <= CPAD

# ----------------------------------------------------------------------------
# Packed blob layouts
# ----------------------------------------------------------------------------
# activation blob (rebuilt every call)
XIN_H, XIN_W = 24, W_IN
ROW_XP = 0                               # 8 rows : conv input (C_PROFILE, B*LSEG)
ROW_XG = 8                               # 16 rows: fused GRU input (ICMP, T_GRU*B)

# weight blob (packed ONCE per parameter set)
WBLOB_W = 56
ROW_CONV1 = 0                            # 8 rows : [W1 (8, 3*8)  | b1]
ROW_CONV2 = 8                            # 8 rows : [W2 (8, 6*8)  | b2]
ROW_CONV3 = 16                           # 16 rows: [W3 (10, 3*8) | b3]
ROW_WIH = 32                             # 48 rows: [Wih_fused (48,16) | bih]
ROW_WHH = 80                             # 48 rows: [Whh_fused (48,16) | bhh]
ROW_SEG = 128                            # 32 rows: seg (W3, B) column->batch map
ROW_HEADW = 160                          # 8 rows : [W_campaign (3,10) | W_meeting (3,5) | b_fc]
WBLOB_H = 168


# ----------------------------------------------------------------------------
# Pallas kernel: one invocation handles the whole batch
# ----------------------------------------------------------------------------
def _inv_sales_kernel(xin_ref, wb_ref, whead_ref, out_ref):
    f32 = jnp.float32

    # ---- HistoricalConv1D: im2col patches built in vregs, one matmul/layer ----
    def conv_layer(x, row, ktaps, cout):
        w = wb_ref[row:row + cout, 0:ktaps * CPAD]                 # (Cout, K*8)
        b = wb_ref[row:row + cout, ktaps * CPAD:ktaps * CPAD + 1]  # (Cout, 1)
        wout = x.shape[1] - (ktaps - 1)
        patches = jnp.concatenate([x[:, k:k + wout] for k in range(ktaps)], axis=0)
        y = jnp.dot(w, patches, preferred_element_type=f32) + b
        return jnp.maximum(y, 0.0)

    xp = xin_ref[ROW_XP:ROW_XP + CPAD, :]                    # (8, 40)
    h = conv_layer(xp, ROW_CONV1, KSIZE, CPAD)               # (8, 38)  rows 4..7 zero
    h = conv_layer(h, ROW_CONV2, 2 * KSIZE, CPAD)            # (8, 33)  rows 2..7 zero
    h3 = conv_layer(h, ROW_CONV3, KSIZE, OUT_PROFILE)        # (10, 31) post-ReLU

    # ---- fused (campaign ⊕ meeting) single-layer GRU, batch on lanes ----------
    xg = xin_ref[ROW_XG:ROW_XG + ICMP, 0:T_GRU * B]          # (16, T*B)
    wih = wb_ref[ROW_WIH:ROW_WIH + 3 * HTP, 0:ICMP]          # (48, 16)
    bih = wb_ref[ROW_WIH:ROW_WIH + 3 * HTP, ICMP:ICMP + 1]   # (48, 1)
    whh = wb_ref[ROW_WHH:ROW_WHH + 3 * HTP, 0:HTP]           # (48, 16) block-diag/gate
    bhh = wb_ref[ROW_WHH:ROW_WHH + 3 * HTP, HTP:HTP + 1]     # (48, 1)

    # all timesteps / gates / both GRUs in ONE matmul
    gx = jnp.dot(wih, xg, preferred_element_type=f32) + bih  # (48, T*B)

    def gru_step(gxt, gh, h_prev):
        # gate rows (r | z | n), each padded to HTP; r & z share one EUP pass
        rz = jax.nn.sigmoid(gxt[0:2 * HTP] + gh[0:2 * HTP])
        r = rz[0:HTP]
        z = rz[HTP:2 * HTP]
        n = jnp.tanh(gxt[2 * HTP:3 * HTP] + r * gh[2 * HTP:3 * HTP])
        return (1.0 - z) * n + z * h_prev

    # t = 0: h_prev = 0  =>  Whh @ h = 0, gh = bhh (skips one MXU round trip)
    h = gru_step(gx[:, 0:B], bhh, jnp.zeros((HTP, B), f32))
    hc_snap = h
    hm_snap = h
    for t in range(1, T_GRU):                                # serial recurrence only
        c0 = t * B
        gh = jnp.dot(whh, h, preferred_element_type=f32) + bhh   # ONE fused matmul/step
        h = gru_step(gx[:, c0:c0 + B], gh, h)
        if t == T_CAMPAIGN - 1:
            hc_snap = h
        if t == T_MEETING - 1:
            hm_snap = h

    h_campaign = hc_snap[0:H_CAMPAIGN]                       # (10, B)
    h_meeting = hm_snap[H_CAMPAIGN:H_CAMPAIGN + H_MEETING]   # (5, B)

    # ---- head: relu(cat([flatten(h3), meeting, campaign])) @ W_fc^T + b --------
    # profile part: VPU multiply + sublane reduce + tiny segment-sum matmul.
    # relu on h3 is a no-op (post-ReLU); garbage columns hit zero head weights.
    s = jnp.sum(h3[None, :, :] * whead_ref[...], axis=1)                  # (O, W3)
    seg = wb_ref[ROW_SEG:ROW_SEG + W3, 0:B]                               # (W3, B)
    prof = jnp.dot(s, seg, preferred_element_type=f32)                    # (O, B)

    hw = wb_ref[ROW_HEADW:ROW_HEADW + OUT_CHANNEL, 0:HT + 1]              # (O, 16)
    w_camp = hw[:, 0:H_CAMPAIGN]
    w_meet = hw[:, H_CAMPAIGN:HT]
    b_fc = hw[:, HT:HT + 1]

    out_ref[...] = (prof
                    + jnp.dot(w_camp, jnp.maximum(h_campaign, 0.0),
                              preferred_element_type=f32)
                    + jnp.dot(w_meet, jnp.maximum(h_meeting, 0.0),
                              preferred_element_type=f32)
                    + b_fc)                                               # (O, B)


# ----------------------------------------------------------------------------
# Parameter packing: input-independent, run ONCE per parameter set (hoisted)
# ----------------------------------------------------------------------------
def pack_params(params):
    f32 = jnp.float32
    blob = jnp.zeros((WBLOB_H, WBLOB_W), f32)

    def put_conv(blob, row, w, b):
        cout, cin, k = w.shape
        wt = jnp.transpose(w.astype(f32), (0, 2, 1))                 # (Cout, K, Cin)
        wt = jnp.pad(wt, ((0, 0), (0, 0), (0, CPAD - cin)))          # (Cout, K, CPAD)
        wt = wt.reshape(cout, k * CPAD)
        blob = blob.at[row:row + cout, 0:k * CPAD].set(wt)
        blob = blob.at[row:row + cout, k * CPAD].set(b.astype(f32))
        return blob

    blob = put_conv(blob, ROW_CONV1, params["conv1_w"], params["conv1_b"])
    blob = put_conv(blob, ROW_CONV2, params["conv2_w"], params["conv2_b"])
    blob = put_conv(blob, ROW_CONV3, params["conv3_w"], params["conv3_b"])

    # fused GRU blobs: gate order (r, z, n); per-gate rows padded to HTP;
    # hidden/input column layout = [campaign | meeting | pad] (block-diagonal).
    wih_f = jnp.zeros((3 * HTP, ICMP), f32)
    whh_f = jnp.zeros((3 * HTP, HTP), f32)
    bih_f = jnp.zeros((3 * HTP,), f32)
    bhh_f = jnp.zeros((3 * HTP,), f32)

    def put_gru(wih_f, whh_f, bih_f, bhh_f, wih, whh, bih, bhh, hidden, row_off, in_off, in_sz):
        for g in range(3):
            r0 = g * HTP + row_off
            sl = slice(g * hidden, (g + 1) * hidden)
            wih_f = wih_f.at[r0:r0 + hidden, in_off:in_off + in_sz].set(wih[sl].astype(f32))
            whh_f = whh_f.at[r0:r0 + hidden, row_off:row_off + hidden].set(whh[sl].astype(f32))
            bih_f = bih_f.at[r0:r0 + hidden].set(bih[sl].astype(f32))
            bhh_f = bhh_f.at[r0:r0 + hidden].set(bhh[sl].astype(f32))
        return wih_f, whh_f, bih_f, bhh_f

    wih_f, whh_f, bih_f, bhh_f = put_gru(
        wih_f, whh_f, bih_f, bhh_f,
        params["gru_c_wih"], params["gru_c_whh"], params["gru_c_bih"], params["gru_c_bhh"],
        H_CAMPAIGN, 0, 0, C_CAMPAIGN)
    wih_f, whh_f, bih_f, bhh_f = put_gru(
        wih_f, whh_f, bih_f, bhh_f,
        params["gru_m_wih"], params["gru_m_whh"], params["gru_m_bih"], params["gru_m_bhh"],
        H_MEETING, H_CAMPAIGN, C_CAMPAIGN, C_MEETING)

    blob = blob.at[ROW_WIH:ROW_WIH + 3 * HTP, 0:ICMP].set(wih_f)
    blob = blob.at[ROW_WIH:ROW_WIH + 3 * HTP, ICMP].set(bih_f)
    blob = blob.at[ROW_WHH:ROW_WHH + 3 * HTP, 0:HTP].set(whh_f)
    blob = blob.at[ROW_WHH:ROW_WHH + 3 * HTP, HTP].set(bhh_f)

    # head: fc columns ordered [profile_flat (C,L3) | meeting | campaign] to match
    # torch.cat([h_profile_flatten, h_meeting_squeezed, h_campaign_squeezed], dim=1)
    n_prof = OUT_PROFILE * L3
    fc_w = params["fc_w"].astype(f32)                                 # (O, LINEAR_IN)
    wprof = fc_w[:, :n_prof].reshape(OUT_CHANNEL, OUT_PROFILE, L3)    # [o, c, l]
    wprof = jnp.pad(wprof, ((0, 0), (0, 0), (0, LSEG - L3)))          # zero garbage cols
    whead = jnp.tile(wprof, (1, 1, B))[:, :, :W3]                     # (O, C, W3)

    cols = jnp.arange(W3)
    seg = (cols[:, None] // LSEG == jnp.arange(B)[None, :]).astype(f32)   # (W3, B)
    blob = blob.at[ROW_SEG:ROW_SEG + W3, 0:B].set(seg)

    headw = jnp.concatenate(
        [fc_w[:, n_prof + H_MEETING:n_prof + H_MEETING + H_CAMPAIGN],     # campaign
         fc_w[:, n_prof:n_prof + H_MEETING],                              # meeting
         params["fc_b"].astype(f32).reshape(OUT_CHANNEL, 1)], axis=1)     # (O, 16)
    blob = blob.at[ROW_HEADW:ROW_HEADW + OUT_CHANNEL, 0:HT + 1].set(headw)
    return blob, whead


# ----------------------------------------------------------------------------
# Forward wrapper: per-call input packing (glue) + pallas_call
# ----------------------------------------------------------------------------
def inv_sales_net_forward(cust_profile, campaign_history, meeting_history, wblob, whead):
    f32 = jnp.float32

    # conv input (B,L,C) -> (C, B*LSEG); per-batch zero pad of PAD1 on each side
    xp = jnp.transpose(cust_profile.astype(f32), (2, 0, 1))
    xp = jnp.pad(xp, ((0, 0), (0, 0), (PAD1, PAD1))).reshape(C_PROFILE, W_IN)

    # GRU inputs (B,T,I) -> (I, T_GRU*B), column = t*B + b, zero-padded over time
    xc = jnp.transpose(campaign_history.astype(f32), (2, 1, 0))
    xc = jnp.pad(xc, ((0, 0), (0, T_GRU - T_CAMPAIGN), (0, 0))).reshape(C_CAMPAIGN, T_GRU * B)
    xm = jnp.transpose(meeting_history.astype(f32), (2, 1, 0))
    xm = jnp.pad(xm, ((0, 0), (0, T_GRU - T_MEETING), (0, 0))).reshape(C_MEETING, T_GRU * B)

    xin = jnp.zeros((XIN_H, XIN_W), f32)
    xin = xin.at[ROW_XP:ROW_XP + C_PROFILE, :].set(xp)
    xin = xin.at[ROW_XG:ROW_XG + C_CAMPAIGN, 0:T_GRU * B].set(xc)
    xin = xin.at[ROW_XG + C_CAMPAIGN:ROW_XG + ICM, 0:T_GRU * B].set(xm)

    out = pl.pallas_call(
        _inv_sales_kernel,
        out_shape=jax.ShapeDtypeStruct((OUT_CHANNEL, B), f32),
        grid=(1,),
        in_specs=[pl.BlockSpec((XIN_H, XIN_W), lambda i: (0, 0)),
                  pl.BlockSpec((WBLOB_H, WBLOB_W), lambda i: (0, 0)),
                  pl.BlockSpec((OUT_CHANNEL, OUT_PROFILE, W3), lambda i: (0, 0, 0))],
        out_specs=pl.BlockSpec((OUT_CHANNEL, B), lambda i: (0, 0)),
        compiler_params=pltpu.CompilerParams(dimension_semantics=("arbitrary",)),
    )(xin, wblob, whead)
    # TODO(synk): for large-batch serving, split B across a "parallel" grid axis so
    # the second TensorCore on v7x is used; at B=2 a single step is optimal.
    return out.T                                                       # (B, OUT_CHANNEL)


# ----------------------------------------------------------------------------
# Deterministic parameter init (shapes follow the PyTorch module __init__)
# ----------------------------------------------------------------------------
def _xavier(key, shape, fan_in, fan_out):
    std = (2.0 / (fan_in + fan_out)) ** 0.5
    return std * jax.random.normal(key, shape, dtype=jnp.float32)


def _uniform(key, shape, bound):
    return jax.random.uniform(key, shape, dtype=jnp.float32, minval=-bound, maxval=bound)


def init_params(key):
    ks = jax.random.split(key, 20)
    c1o, c2o = C_PROFILE // 2, C_PROFILE // 4
    params = {
        # HistoricalConv1D
        "conv1_w": _xavier(ks[0], (c1o, C_PROFILE, KSIZE), C_PROFILE * KSIZE, c1o * KSIZE),
        "conv1_b": _uniform(ks[1], (c1o,), 1.0 / (C_PROFILE * KSIZE) ** 0.5),
        "conv2_w": _xavier(ks[2], (c2o, c1o, 2 * KSIZE), c1o * 2 * KSIZE, c2o * 2 * KSIZE),
        "conv2_b": _uniform(ks[3], (c2o,), 1.0 / (c1o * 2 * KSIZE) ** 0.5),
        "conv3_w": _xavier(ks[4], (OUT_PROFILE, c2o, KSIZE), c2o * KSIZE, OUT_PROFILE * KSIZE),
        "conv3_b": _uniform(ks[5], (OUT_PROFILE,), 1.0 / (c2o * KSIZE) ** 0.5),
        # campaign GRU
        "gru_c_wih": _uniform(ks[6], (3 * H_CAMPAIGN, C_CAMPAIGN), 1.0 / H_CAMPAIGN ** 0.5),
        "gru_c_whh": _uniform(ks[7], (3 * H_CAMPAIGN, H_CAMPAIGN), 1.0 / H_CAMPAIGN ** 0.5),
        "gru_c_bih": _uniform(ks[8], (3 * H_CAMPAIGN,), 1.0 / H_CAMPAIGN ** 0.5),
        "gru_c_bhh": _uniform(ks[9], (3 * H_CAMPAIGN,), 1.0 / H_CAMPAIGN ** 0.5),
        # meeting GRU
        "gru_m_wih": _uniform(ks[10], (3 * H_MEETING, C_MEETING), 1.0 / H_MEETING ** 0.5),
        "gru_m_whh": _uniform(ks[11], (3 * H_MEETING, H_MEETING), 1.0 / H_MEETING ** 0.5),
        "gru_m_bih": _uniform(ks[12], (3 * H_MEETING,), 1.0 / H_MEETING ** 0.5),
        "gru_m_bhh": _uniform(ks[13], (3 * H_MEETING,), 1.0 / H_MEETING ** 0.5),
        # final Linear
        "fc_w": _xavier(ks[14], (OUT_CHANNEL, LINEAR_IN), LINEAR_IN, OUT_CHANNEL),
        "fc_b": _uniform(ks[15], (OUT_CHANNEL,), 1.0 / LINEAR_IN ** 0.5),
    }
    return params


if __name__ == "__main__":
    key = jax.random.PRNGKey(0)
    k_in, k_par = jax.random.split(key)
    k1, k2, k3 = jax.random.split(k_in, 3)

    cust_profile = jax.random.normal(k1, (B, HIST_LEN, C_PROFILE), dtype=jnp.float32)
    campaign_history = jax.random.normal(k2, (B, T_CAMPAIGN, C_CAMPAIGN), dtype=jnp.float32)
    meeting_history = jax.random.normal(k3, (B, T_MEETING, C_MEETING), dtype=jnp.float32)
    params = init_params(k_par)

    # weight packing is input-independent: done once, outside the forward path
    wblob, whead = pack_params(params)
    wblob = jax.block_until_ready(wblob)

    fwd = jax.jit(inv_sales_net_forward)
    out = fwd(cust_profile, campaign_history, meeting_history, wblob, whead)
    out = jax.block_until_ready(out)
    assert out.shape == (B, OUT_CHANNEL) and out.dtype == jnp.float32
    print("KERNEL_OK")
</pallas_src>

<mosaic_0001>
module attributes {stable_mosaic.version = 11 : i64} {
  func.func @_inv_sales_kernel(%arg0: i32, %arg1: memref<24x40xf32, #tpu.memory_space<vmem>>, %arg2: memref<168x56xf32, #tpu.memory_space<vmem>>, %arg3: memref<3x10x31xf32, #tpu.memory_space<vmem>>, %arg4: memref<3x2xf32, #tpu.memory_space<vmem>>) attributes {dimension_semantics = [#tpu.dimension_semantics<arbitrary>], iteration_bounds = array<i64: 1>, scalar_prefetch = 0 : i64, scratch_operands = 0 : i64, tpu.core_type = #tpu.core_type<tc>, window_params = [{pipeline_mode = #tpu.pipeline_mode<synchronous>, transform_indices = @transform_0, window_bounds = array<i64: 24, 40>}, {pipeline_mode = #tpu.pipeline_mode<synchronous>, transform_indices = @transform_1, window_bounds = array<i64: 168, 56>}, {pipeline_mode = #tpu.pipeline_mode<synchronous>, transform_indices = @transform_2, window_bounds = array<i64: 3, 10, 31>}, {pipeline_mode = #tpu.pipeline_mode<synchronous>, transform_indices = @transform_3, window_bounds = array<i64: 3, 2>}]} {
    %c0 = arith.constant 0 : index
    %c0_0 = arith.constant 0 : index
    %0 = vector.load %arg1[%c0, %c0_0] : memref<24x40xf32, #tpu.memory_space<vmem>>, vector<8x40xf32>
    %c0_1 = arith.constant 0 : index
    %c0_2 = arith.constant 0 : index
    %1 = vector.load %arg2[%c0_1, %c0_2] : memref<168x56xf32, #tpu.memory_space<vmem>>, vector<8x24xf32>
    %c0_3 = arith.constant 0 : index
    %c24 = arith.constant 24 : index
    %2 = vector.load %arg2[%c0_3, %c24] : memref<168x56xf32, #tpu.memory_space<vmem>>, vector<8x1xf32>
    %3 = vector.extract_strided_slice %0 {offsets = [0, 0], sizes = [8, 38], strides = [1, 1]} : vector<8x40xf32> to vector<8x38xf32>
    %4 = vector.extract_strided_slice %0 {offsets = [0, 1], sizes = [8, 38], strides = [1, 1]} : vector<8x40xf32> to vector<8x38xf32>
    %5 = vector.extract_strided_slice %0 {offsets = [0, 2], sizes = [8, 38], strides = [1, 1]} : vector<8x40xf32> to vector<8x38xf32>
    %6 = tpu.concatenate %3, %4, %5 in 0 : vector<8x38xf32>, vector<8x38xf32>, vector<8x38xf32> -> vector<24x38xf32>
    %cst = arith.constant dense<0.000000e+00> : vector<8x38xf32>
    %7 = tpu.matmul %1, %6, %cst {dimension_numbers = #tpu.dot_dimension_numbers<[1], [0], [0], [1], [0, 0, 1, 1], [], []>} : vector<8x24xf32>, vector<24x38xf32>, vector<8x38xf32> -> vector<8x38xf32>
    %8 = vector.broadcast %2 : vector<8x1xf32> to vector<8x38xf32>
    %9 = arith.addf %7, %8 : vector<8x38xf32>
    %cst_4 = arith.constant 0.000000e+00 : f32
    %10 = vector.broadcast %cst_4 : f32 to vector<8x38xf32>
    %11 = arith.maximumf %9, %10 : vector<8x38xf32>
    %c8 = arith.constant 8 : index
    %c0_5 = arith.constant 0 : index
    %12 = vector.load %arg2[%c8, %c0_5] : memref<168x56xf32, #tpu.memory_space<vmem>>, vector<8x48xf32>
    %c8_6 = arith.constant 8 : index
    %c48 = arith.constant 48 : index
    %13 = vector.load %arg2[%c8_6, %c48] : memref<168x56xf32, #tpu.memory_space<vmem>>, vector<8x1xf32>
    %14 = vector.extract_strided_slice %11 {offsets = [0, 0], sizes = [8, 33], strides = [1, 1]} : vector<8x38xf32> to vector<8x33xf32>
    %15 = vector.extract_strided_slice %11 {offsets = [0, 1], sizes = [8, 33], strides = [1, 1]} : vector<8x38xf32> to vector<8x33xf32>
    %16 = vector.extract_strided_slice %11 {offsets = [0, 2], sizes = [8, 33], strides = [1, 1]} : vector<8x38xf32> to vector<8x33xf32>
    %17 = vector.extract_strided_slice %11 {offsets = [0, 3], sizes = [8, 33], strides = [1, 1]} : vector<8x38xf32> to vector<8x33xf32>
    %18 = vector.extract_strided_slice %11 {offsets = [0, 4], sizes = [8, 33], strides = [1, 1]} : vector<8x38xf32> to vector<8x33xf32>
    %19 = vector.extract_strided_slice %11 {offsets = [0, 5], sizes = [8, 33], strides = [1, 1]} : vector<8x38xf32> to vector<8x33xf32>
    %20 = tpu.concatenate %14, %15, %16, %17, %18, %19 in 0 : vector<8x33xf32>, vector<8x33xf32>, vector<8x33xf32>, vector<8x33xf32>, vector<8x33xf32>, vector<8x33xf32> -> vector<48x33xf32>
    %cst_7 = arith.constant dense<0.000000e+00> : vector<8x33xf32>
    %21 = tpu.matmul %12, %20, %cst_7 {dimension_numbers = #tpu.dot_dimension_numbers<[1], [0], [0], [1], [0, 0, 1, 1], [], []>} : vector<8x48xf32>, vector<48x33xf32>, vector<8x33xf32> -> vector<8x33xf32>
    %22 = vector.broadcast %13 : vector<8x1xf32> to vector<8x33xf32>
    %23 = arith.addf %21, %22 : vector<8x33xf32>
    %cst_8 = arith.constant 0.000000e+00 : f32
    %24 = vector.broadcast %cst_8 : f32 to vector<8x33xf32>
    %25 = arith.maximumf %23, %24 : vector<8x33xf32>
    %c16 = arith.constant 16 : index
    %c0_9 = arith.constant 0 : index
    %26 = vector.load %arg2[%c16, %c0_9] : memref<168x56xf32, #tpu.memory_space<vmem>>, vector<10x24xf32>
    %c16_10 = arith.constant 16 : index
    %c24_11 = arith.constant 24 : index
    %27 = vector.load %arg2[%c16_10, %c24_11] : memref<168x56xf32, #tpu.memory_space<vmem>>, vector<10x1xf32>
    %28 = vector.extract_strided_slice %25 {offsets = [0, 0], sizes = [8, 31], strides = [1, 1]} : vector<8x33xf32> to vector<8x31xf32>
    %29 = vector.extract_strided_slice %25 {offsets = [0, 1], sizes = [8, 31], strides = [1, 1]} : vector<8x33xf32> to vector<8x31xf32>
    %30 = vector.extract_strided_slice %25 {offsets = [0, 2], sizes = [8, 31], strides = [1, 1]} : vector<8x33xf32> to vector<8x31xf32>
    %31 = tpu.concatenate %28, %29, %30 in 0 : vector<8x31xf32>, vector<8x31xf32>, vector<8x31xf32> -> vector<24x31xf32>
    %cst_12 = arith.constant dense<0.000000e+00> : vector<10x31xf32>
    %32 = tpu.matmul %26, %31, %cst_12 {dimension_numbers = #tpu.dot_dimension_numbers<[1], [0], [0], [1], [0, 0, 1, 1], [], []>} : vector<10x24xf32>, vector<24x31xf32>, vector<10x31xf32> -> vector<10x31xf32>
    %33 = vector.broadcast %27 : vector<10x1xf32> to vector<10x31xf32>
    %34 = arith.addf %32, %33 : vector<10x31xf32>
    %cst_13 = arith.constant 0.000000e+00 : f32
    %35 = vector.broadcast %cst_13 : f32 to vector<10x31xf32>
    %36 = arith.maximumf %34, %35 : vector<10x31xf32>
    %c8_14 = arith.constant 8 : index
    %c0_15 = arith.constant 0 : index
    %37 = vector.load %arg1[%c8_14, %c0_15] : memref<24x40xf32, #tpu.memory_space<vmem>>, vector<16x16xf32>
    %c32 = arith.constant 32 : index
    %c0_16 = arith.constant 0 : index
    %38 = vector.load %arg2[%c32, %c0_16] : memref<168x56xf32, #tpu.memory_space<vmem>>, vector<48x16xf32>
    %c32_17 = arith.constant 32 : index
    %c16_18 = arith.constant 16 : index
    %39 = vector.load %arg2[%c32_17, %c16_18] : memref<168x56xf32, #tpu.memory_space<vmem>>, vector<48x1xf32>
    %c80 = arith.constant 80 : index
    %c0_19 = arith.constant 0 : index
    %40 = vector.load %arg2[%c80, %c0_19] : memref<168x56xf32, #tpu.memory_space<vmem>>, vector<48x16xf32>
    %c80_20 = arith.constant 80 : index
    %c16_21 = arith.constant 16 : index
    %41 = vector.load %arg2[%c80_20, %c16_21] : memref<168x56xf32, #tpu.memory_space<vmem>>, vector<48x1xf32>
    %cst_22 = arith.constant dense<0.000000e+00> : vector<48x16xf32>
    %42 = tpu.matmul %38, %37, %cst_22 {dimension_numbers = #tpu.dot_dimension_numbers<[1], [0], [0], [1], [0, 0, 1, 1], [], []>} : vector<48x16xf32>, vector<16x16xf32>, vector<48x16xf32> -> vector<48x16xf32>
    %43 = vector.broadcast %39 : vector<48x1xf32> to vector<48x16xf32>
    %44 = arith.addf %42, %43 : vector<48x16xf32>
    %45 = vector.extract_strided_slice %44 {offsets = [0, 0], sizes = [48, 2], strides = [1, 1]} : vector<48x16xf32> to vector<48x2xf32>
    %cst_23 = arith.constant 0.000000e+00 : f32
    %46 = vector.broadcast %cst_23 : f32 to vector<16x2xf32>
    %47 = vector.extract_strided_slice %45 {offsets = [0, 0], sizes = [32, 2], strides = [1, 1]} : vector<48x2xf32> to vector<32x2xf32>
    %48 = vector.extract_strided_slice %41 {offsets = [0, 0], sizes = [32, 1], strides = [1, 1]} : vector<48x1xf32> to vector<32x1xf32>
    %49 = vector.broadcast %48 : vector<32x1xf32> to vector<32x2xf32>
    %50 = arith.addf %47, %49 : vector<32x2xf32>
    %51 = arith.negf %50 : vector<32x2xf32>
    %52 = math.exp %51 : vector<32x2xf32>
    %cst_24 = arith.constant 1.000000e+00 : f32
    %53 = vector.broadcast %cst_24 : f32 to vector<32x2xf32>
    %54 = arith.addf %53, %52 : vector<32x2xf32>
    %55 = arith.divf %53, %54 : vector<32x2xf32>
    %56 = vector.extract_strided_slice %55 {offsets = [0, 0], sizes = [16, 2], strides = [1, 1]} : vector<32x2xf32> to vector<16x2xf32>
    %57 = vector.extract_strided_slice %55 {offsets = [16, 0], sizes = [16, 2], strides = [1, 1]} : vector<32x2xf32> to vector<16x2xf32>
    %58 = vector.extract_strided_slice %45 {offsets = [32, 0], sizes = [16, 2], strides = [1, 1]} : vector<48x2xf32> to vector<16x2xf32>
    %59 = vector.extract_strided_slice %41 {offsets = [32, 0], sizes = [16, 1], strides = [1, 1]} : vector<48x1xf32> to vector<16x1xf32>
    %60 = vector.broadcast %59 : vector<16x1xf32> to vector<16x2xf32>
    %61 = arith.mulf %56, %60 : vector<16x2xf32>
    %62 = arith.addf %58, %61 : vector<16x2xf32>
    %63 = math.tanh %62 : vector<16x2xf32>
    %cst_25 = arith.constant 1.000000e+00 : f32
    %64 = vector.broadcast %cst_25 : f32 to vector<16x2xf32>
    %65 = arith.subf %64, %57 : vector<16x2xf32>
    %66 = arith.mulf %65, %63 : vector<16x2xf32>
    %67 = arith.mulf %57, %46 : vector<16x2xf32>
    %68 = arith.addf %66, %67 : vector<16x2xf32>
    %cst_26 = arith.constant dense<0.000000e+00> : vector<48x2xf32>
    %69 = tpu.matmul %40, %68, %cst_26 {dimension_numbers = #tpu.dot_dimension_numbers<[1], [0], [0], [1], [0, 0, 1, 1], [], []>} : vector<48x16xf32>, vector<16x2xf32>, vector<48x2xf32> -> vector<48x2xf32>
    %70 = vector.broadcast %41 : vector<48x1xf32> to vector<48x2xf32>
    %71 = arith.addf %69, %70 : vector<48x2xf32>
    %72 = vector.extract_strided_slice %44 {offsets = [0, 2], sizes = [48, 2], strides = [1, 1]} : vector<48x16xf32> to vector<48x2xf32>
    %73 = vector.extract_strided_slice %72 {offsets = [0, 0], sizes = [32, 2], strides = [1, 1]} : vector<48x2xf32> to vector<32x2xf32>
    %74 = vector.extract_strided_slice %71 {offsets = [0, 0], sizes = [32, 2], strides = [1, 1]} : vector<48x2xf32> to vector<32x2xf32>
    %75 = arith.addf %73, %74 : vector<32x2xf32>
    %76 = arith.negf %75 : vector<32x2xf32>
    %77 = math.exp %76 : vector<32x2xf32>
    %cst_27 = arith.constant 1.000000e+00 : f32
    %78 = vector.broadcast %cst_27 : f32 to vector<32x2xf32>
    %79 = arith.addf %78, %77 : vector<32x2xf32>
    %80 = arith.divf %78, %79 : vector<32x2xf32>
    %81 = vector.extract_strided_slice %80 {offsets = [0, 0], sizes = [16, 2], strides = [1, 1]} : vector<32x2xf32> to vector<16x2xf32>
    %82 = vector.extract_strided_slice %80 {offsets = [16, 0], sizes = [16, 2], strides = [1, 1]} : vector<32x2xf32> to vector<16x2xf32>
    %83 = vector.extract_strided_slice %72 {offsets = [32, 0], sizes = [16, 2], strides = [1, 1]} : vector<48x2xf32> to vector<16x2xf32>
    %84 = vector.extract_strided_slice %71 {offsets = [32, 0], sizes = [16, 2], strides = [1, 1]} : vector<48x2xf32> to vector<16x2xf32>
    %85 = arith.mulf %81, %84 : vector<16x2xf32>
    %86 = arith.addf %83, %85 : vector<16x2xf32>
    %87 = math.tanh %86 : vector<16x2xf32>
    %cst_28 = arith.constant 1.000000e+00 : f32
    %88 = vector.broadcast %cst_28 : f32 to vector<16x2xf32>
    %89 = arith.subf %88, %82 : vector<16x2xf32>
    %90 = arith.mulf %89, %87 : vector<16x2xf32>
    %91 = arith.mulf %82, %68 : vector<16x2xf32>
    %92 = arith.addf %90, %91 : vector<16x2xf32>
    %cst_29 = arith.constant dense<0.000000e+00> : vector<48x2xf32>
    %93 = tpu.matmul %40, %92, %cst_29 {dimension_numbers = #tpu.dot_dimension_numbers<[1], [0], [0], [1], [0, 0, 1, 1], [], []>} : vector<48x16xf32>, vector<16x2xf32>, vector<48x2xf32> -> vector<48x2xf32>
    %94 = vector.broadcast %41 : vector<48x1xf32> to vector<48x2xf32>
    %95 = arith.addf %93, %94 : vector<48x2xf32>
    %96 = vector.extract_strided_slice %44 {offsets = [0, 4], sizes = [48, 2], strides = [1, 1]} : vector<48x16xf32> to vector<48x2xf32>
    %97 = vector.extract_strided_slice %96 {offsets = [0, 0], sizes = [32, 2], strides = [1, 1]} : vector<48x2xf32> to vector<32x2xf32>
    %98 = vector.extract_strided_slice %95 {offsets = [0, 0], sizes = [32, 2], strides = [1, 1]} : vector<48x2xf32> to vector<32x2xf32>
    %99 = arith.addf %97, %98 : vector<32x2xf32>
    %100 = arith.negf %99 : vector<32x2xf32>
    %101 = math.exp %100 : vector<32x2xf32>
    %cst_30 = arith.constant 1.000000e+00 : f32
    %102 = vector.broadcast %cst_30 : f32 to vector<32x2xf32>
    %103 = arith.addf %102, %101 : vector<32x2xf32>
    %104 = arith.divf %102, %103 : vector<32x2xf32>
    %105 = vector.extract_strided_slice %104 {offsets = [0, 0], sizes = [16, 2], strides = [1, 1]} : vector<32x2xf32> to vector<16x2xf32>
    %106 = vector.extract_strided_slice %104 {offsets = [16, 0], sizes = [16, 2], strides = [1, 1]} : vector<32x2xf32> to vector<16x2xf32>
    %107 = vector.extract_strided_slice %96 {offsets = [32, 0], sizes = [16, 2], strides = [1, 1]} : vector<48x2xf32> to vector<16x2xf32>
    %108 = vector.extract_strided_slice %95 {offsets = [32, 0], sizes = [16, 2], strides = [1, 1]} : vector<48x2xf32> to vector<16x2xf32>
    %109 = arith.mulf %105, %108 : vector<16x2xf32>
    %110 = arith.addf %107, %109 : vector<16x2xf32>
    %111 = math.tanh %110 : vector<16x2xf32>
    %cst_31 = arith.constant 1.000000e+00 : f32
    %112 = vector.broadcast %cst_31 : f32 to vector<16x2xf32>
    %113 = arith.subf %112, %106 : vector<16x2xf32>
    %114 = arith.mulf %113, %111 : vector<16x2xf32>
    %115 = arith.mulf %106, %92 : vector<16x2xf32>
    %116 = arith.addf %114, %115 : vector<16x2xf32>
    %cst_32 = arith.constant dense<0.000000e+00> : vector<48x2xf32>
    %117 = tpu.matmul %40, %116, %cst_32 {dimension_numbers = #tpu.dot_dimension_numbers<[1], [0], [0], [1], [0, 0, 1, 1], [], []>} : vector<48x16xf32>, vector<16x2xf32>, vector<48x2xf32> -> vector<48x2xf32>
    %118 = vector.broadcast %41 : vector<48x1xf32> to vector<48x2xf32>
    %119 = arith.addf %117, %118 : vector<48x2xf32>
    %120 = vector.extract_strided_slice %44 {offsets = [0, 6], sizes = [48, 2], strides = [1, 1]} : vector<48x16xf32> to vector<48x2xf32>
    %121 = vector.extract_strided_slice %120 {offsets = [0, 0], sizes = [32, 2], strides = [1, 1]} : vector<48x2xf32> to vector<32x2xf32>
    %122 = vector.extract_strided_slice %119 {offsets = [0, 0], sizes = [32, 2], strides = [1, 1]} : vector<48x2xf32> to vector<32x2xf32>
    %123 = arith.addf %121, %122 : vector<32x2xf32>
    %124 = arith.negf %123 : vector<32x2xf32>
    %125 = math.exp %124 : vector<32x2xf32>
    %cst_33 = arith.constant 1.000000e+00 : f32
    %126 = vector.broadcast %cst_33 : f32 to vector<32x2xf32>
    %127 = arith.addf %126, %125 : vector<32x2xf32>
    %128 = arith.divf %126, %127 : vector<32x2xf32>
    %129 = vector.extract_strided_slice %128 {offsets = [0, 0], sizes = [16, 2], strides = [1, 1]} : vector<32x2xf32> to vector<16x2xf32>
    %130 = vector.extract_strided_slice %128 {offsets = [16, 0], sizes = [16, 2], strides = [1, 1]} : vector<32x2xf32> to vector<16x2xf32>
    %131 = vector.extract_strided_slice %120 {offsets = [32, 0], sizes = [16, 2], strides = [1, 1]} : vector<48x2xf32> to vector<16x2xf32>
    %132 = vector.extract_strided_slice %119 {offsets = [32, 0], sizes = [16, 2], strides = [1, 1]} : vector<48x2xf32> to vector<16x2xf32>
    %133 = arith.mulf %129, %132 : vector<16x2xf32>
    %134 = arith.addf %131, %133 : vector<16x2xf32>
    %135 = math.tanh %134 : vector<16x2xf32>
    %cst_34 = arith.constant 1.000000e+00 : f32
    %136 = vector.broadcast %cst_34 : f32 to vector<16x2xf32>
    %137 = arith.subf %136, %130 : vector<16x2xf32>
    %138 = arith.mulf %137, %135 : vector<16x2xf32>
    %139 = arith.mulf %130, %116 : vector<16x2xf32>
    %140 = arith.addf %138, %139 : vector<16x2xf32>
    %cst_35 = arith.constant dense<0.000000e+00> : vector<48x2xf32>
    %141 = tpu.matmul %40, %140, %cst_35 {dimension_numbers = #tpu.dot_dimension_numbers<[1], [0], [0], [1], [0, 0, 1, 1], [], []>} : vector<48x16xf32>, vector<16x2xf32>, vector<48x2xf32> -> vector<48x2xf32>
    %142 = vector.broadcast %41 : vector<48x1xf32> to vector<48x2xf32>
    %143 = arith.addf %141, %142 : vector<48x2xf32>
    %144 = vector.extract_strided_slice %44 {offsets = [0, 8], sizes = [48, 2], strides = [1, 1]} : vector<48x16xf32> to vector<48x2xf32>
    %145 = vector.extract_strided_slice %144 {offsets = [0, 0], sizes = [32, 2], strides = [1, 1]} : vector<48x2xf32> to vector<32x2xf32>
    %146 = vector.extract_strided_slice %143 {offsets = [0, 0], sizes = [32, 2], strides = [1, 1]} : vector<48x2xf32> to vector<32x2xf32>
    %147 = arith.addf %145, %146 : vector<32x2xf32>
    %148 = arith.negf %147 : vector<32x2xf32>
    %149 = math.exp %148 : vector<32x2xf32>
    %cst_36 = arith.constant 1.000000e+00 : f32
    %150 = vector.broadcast %cst_36 : f32 to vector<32x2xf32>
    %151 = arith.addf %150, %149 : vector<32x2xf32>
    %152 = arith.divf %150, %151 : vector<32x2xf32>
    %153 = vector.extract_strided_slice %152 {offsets = [0, 0], sizes = [16, 2], strides = [1, 1]} : vector<32x2xf32> to vector<16x2xf32>
    %154 = vector.extract_strided_slice %152 {offsets = [16, 0], sizes = [16, 2], strides = [1, 1]} : vector<32x2xf32> to vector<16x2xf32>
    %155 = vector.extract_strided_slice %144 {offsets = [32, 0], sizes = [16, 2], strides = [1, 1]} : vector<48x2xf32> to vector<16x2xf32>
    %156 = vector.extract_strided_slice %143 {offsets = [32, 0], sizes = [16, 2], strides = [1, 1]} : vector<48x2xf32> to vector<16x2xf32>
    %157 = arith.mulf %153, %156 : vector<16x2xf32>
    %158 = arith.addf %155, %157 : vector<16x2xf32>
    %159 = math.tanh %158 : vector<16x2xf32>
    %cst_37 = arith.constant 1.000000e+00 : f32
    %160 = vector.broadcast %cst_37 : f32 to vector<16x2xf32>
    %161 = arith.subf %160, %154 : vector<16x2xf32>
    %162 = arith.mulf %161, %159 : vector<16x2xf32>
    %163 = arith.mulf %154, %140 : vector<16x2xf32>
    %164 = arith.addf %162, %163 : vector<16x2xf32>
    %cst_38 = arith.constant dense<0.000000e+00> : vector<48x2xf32>
    %165 = tpu.matmul %40, %164, %cst_38 {dimension_numbers = #tpu.dot_dimension_numbers<[1], [0], [0], [1], [0, 0, 1, 1], [], []>} : vector<48x16xf32>, vector<16x2xf32>, vector<48x2xf32> -> vector<48x2xf32>
    %166 = vector.broadcast %41 : vector<48x1xf32> to vector<48x2xf32>
    %167 = arith.addf %165, %166 : vector<48x2xf32>
    %168 = vector.extract_strided_slice %44 {offsets = [0, 10], sizes = [48, 2], strides = [1, 1]} : vector<48x16xf32> to vector<48x2xf32>
    %169 = vector.extract_strided_slice %168 {offsets = [0, 0], sizes = [32, 2], strides = [1, 1]} : vector<48x2xf32> to vector<32x2xf32>
    %170 = vector.extract_strided_slice %167 {offsets = [0, 0], sizes = [32, 2], strides = [1, 1]} : vector<48x2xf32> to vector<32x2xf32>
    %171 = arith.addf %169, %170 : vector<32x2xf32>
    %172 = arith.negf %171 : vector<32x2xf32>
    %173 = math.exp %172 : vector<32x2xf32>
    %cst_39 = arith.constant 1.000000e+00 : f32
    %174 = vector.broadcast %cst_39 : f32 to vector<32x2xf32>
    %175 = arith.addf %174, %173 : vector<32x2xf32>
    %176 = arith.divf %174, %175 : vector<32x2xf32>
    %177 = vector.extract_strided_slice %176 {offsets = [0, 0], sizes = [16, 2], strides = [1, 1]} : vector<32x2xf32> to vector<16x2xf32>
    %178 = vector.extract_strided_slice %176 {offsets = [16, 0], sizes = [16, 2], strides = [1, 1]} : vector<32x2xf32> to vector<16x2xf32>
    %179 = vector.extract_strided_slice %168 {offsets = [32, 0], sizes = [16, 2], strides = [1, 1]} : vector<48x2xf32> to vector<16x2xf32>
    %180 = vector.extract_strided_slice %167 {offsets = [32, 0], sizes = [16, 2], strides = [1, 1]} : vector<48x2xf32> to vector<16x2xf32>
    %181 = arith.mulf %177, %180 : vector<16x2xf32>
    %182 = arith.addf %179, %181 : vector<16x2xf32>
    %183 = math.tanh %182 : vector<16x2xf32>
    %cst_40 = arith.constant 1.000000e+00 : f32
    %184 = vector.broadcast %cst_40 : f32 to vector<16x2xf32>
    %185 = arith.subf %184, %178 : vector<16x2xf32>
    %186 = arith.mulf %185, %183 : vector<16x2xf32>
    %187 = arith.mulf %178, %164 : vector<16x2xf32>
    %188 = arith.addf %186, %187 : vector<16x2xf32>
    %cst_41 = arith.constant dense<0.000000e+00> : vector<48x2xf32>
    %189 = tpu.matmul %40, %188, %cst_41 {dimension_numbers = #tpu.dot_dimension_numbers<[1], [0], [0], [1], [0, 0, 1, 1], [], []>} : vector<48x16xf32>, vector<16x2xf32>, vector<48x2xf32> -> vector<48x2xf32>
    %190 = vector.broadcast %41 : vector<48x1xf32> to vector<48x2xf32>
    %191 = arith.addf %189, %190 : vector<48x2xf32>
    %192 = vector.extract_strided_slice %44 {offsets = [0, 12], sizes = [48, 2], strides = [1, 1]} : vector<48x16xf32> to vector<48x2xf32>
    %193 = vector.extract_strided_slice %192 {offsets = [0, 0], sizes = [32, 2], strides = [1, 1]} : vector<48x2xf32> to vector<32x2xf32>
    %194 = vector.extract_strided_slice %191 {offsets = [0, 0], sizes = [32, 2], strides = [1, 1]} : vector<48x2xf32> to vector<32x2xf32>
    %195 = arith.addf %193, %194 : vector<32x2xf32>
    %196 = arith.negf %195 : vector<32x2xf32>
    %197 = math.exp %196 : vector<32x2xf32>
    %cst_42 = arith.constant 1.000000e+00 : f32
    %198 = vector.broadcast %cst_42 : f32 to vector<32x2xf32>
    %199 = arith.addf %198, %197 : vector<32x2xf32>
    %200 = arith.divf %198, %199 : vector<32x2xf32>
    %201 = vector.extract_strided_slice %200 {offsets = [0, 0], sizes = [16, 2], strides = [1, 1]} : vector<32x2xf32> to vector<16x2xf32>
    %202 = vector.extract_strided_slice %200 {offsets = [16, 0], sizes = [16, 2], strides = [1, 1]} : vector<32x2xf32> to vector<16x2xf32>
    %203 = vector.extract_strided_slice %192 {offsets = [32, 0], sizes = [16, 2], strides = [1, 1]} : vector<48x2xf32> to vector<16x2xf32>
    %204 = vector.extract_strided_slice %191 {offsets = [32, 0], sizes = [16, 2], strides = [1, 1]} : vector<48x2xf32> to vector<16x2xf32>
    %205 = arith.mulf %201, %204 : vector<16x2xf32>
    %206 = arith.addf %203, %205 : vector<16x2xf32>
    %207 = math.tanh %206 : vector<16x2xf32>
    %cst_43 = arith.constant 1.000000e+00 : f32
    %208 = vector.broadcast %cst_43 : f32 to vector<16x2xf32>
    %209 = arith.subf %208, %202 : vector<16x2xf32>
    %210 = arith.mulf %209, %207 : vector<16x2xf32>
    %211 = arith.mulf %202, %188 : vector<16x2xf32>
    %212 = arith.addf %210, %211 : vector<16x2xf32>
    %cst_44 = arith.constant dense<0.000000e+00> : vector<48x2xf32>
    %213 = tpu.matmul %40, %212, %cst_44 {dimension_numbers = #tpu.dot_dimension_numbers<[1], [0], [0], [1], [0, 0, 1, 1], [], []>} : vector<48x16xf32>, vector<16x2xf32>, vector<48x2xf32> -> vector<48x2xf32>
    %214 = vector.broadcast %41 : vector<48x1xf32> to vector<48x2xf32>
    %215 = arith.addf %213, %214 : vector<48x2xf32>
    %216 = vector.extract_strided_slice %44 {offsets = [0, 14], sizes = [48, 2], strides = [1, 1]} : vector<48x16xf32> to vector<48x2xf32>
    %217 = vector.extract_strided_slice %216 {offsets = [0, 0], sizes = [32, 2], strides = [1, 1]} : vector<48x2xf32> to vector<32x2xf32>
    %218 = vector.extract_strided_slice %215 {offsets = [0, 0], sizes = [32, 2], strides = [1, 1]} : vector<48x2xf32> to vector<32x2xf32>
    %219 = arith.addf %217, %218 : vector<32x2xf32>
    %220 = arith.negf %219 : vector<32x2xf32>
    %221 = math.exp %220 : vector<32x2xf32>
    %cst_45 = arith.constant 1.000000e+00 : f32
    %222 = vector.broadcast %cst_45 : f32 to vector<32x2xf32>
    %223 = arith.addf %222, %221 : vector<32x2xf32>
    %224 = arith.divf %222, %223 : vector<32x2xf32>
    %225 = vector.extract_strided_slice %224 {offsets = [0, 0], sizes = [16, 2], strides = [1, 1]} : vector<32x2xf32> to vector<16x2xf32>
    %226 = vector.extract_strided_slice %224 {offsets = [16, 0], sizes = [16, 2], strides = [1, 1]} : vector<32x2xf32> to vector<16x2xf32>
    %227 = vector.extract_strided_slice %216 {offsets = [32, 0], sizes = [16, 2], strides = [1, 1]} : vector<48x2xf32> to vector<16x2xf32>
    %228 = vector.extract_strided_slice %215 {offsets = [32, 0], sizes = [16, 2], strides = [1, 1]} : vector<48x2xf32> to vector<16x2xf32>
    %229 = arith.mulf %225, %228 : vector<16x2xf32>
    %230 = arith.addf %227, %229 : vector<16x2xf32>
    %231 = math.tanh %230 : vector<16x2xf32>
    %cst_46 = arith.constant 1.000000e+00 : f32
    %232 = vector.broadcast %cst_46 : f32 to vector<16x2xf32>
    %233 = arith.subf %232, %226 : vector<16x2xf32>
    %234 = arith.mulf %233, %231 : vector<16x2xf32>
    %235 = arith.mulf %226, %212 : vector<16x2xf32>
    %236 = arith.addf %234, %235 : vector<16x2xf32>
    %237 = vector.extract_strided_slice %236 {offsets = [0, 0], sizes = [10, 2], strides = [1, 1]} : vector<16x2xf32> to vector<10x2xf32>
    %238 = vector.extract_strided_slice %164 {offsets = [10, 0], sizes = [5, 2], strides = [1, 1]} : vector<16x2xf32> to vector<5x2xf32>
    %239 = vector.shape_cast %36 : vector<10x31xf32> to vector<1x10x31xf32>
    %c0_47 = arith.constant 0 : index
    %c0_48 = arith.constant 0 : index
    %c0_49 = arith.constant 0 : index
    %240 = vector.load %arg3[%c0_47, %c0_48, %c0_49] : memref<3x10x31xf32, #tpu.memory_space<vmem>>, vector<3x10x31xf32>
    %241 = vector.broadcast %239 : vector<1x10x31xf32> to vector<3x10x31xf32>
    %242 = arith.mulf %241, %240 : vector<3x10x31xf32>
    %cst_50 = arith.constant dense<0.000000e+00> : vector<3x31xf32>
    %243 = vector.multi_reduction <add>, %242, %cst_50 [1] : vector<3x10x31xf32> to vector<3x31xf32>
    %c128 = arith.constant 128 : index
    %c0_51 = arith.constant 0 : index
    %244 = vector.load %arg2[%c128, %c0_51] : memref<168x56xf32, #tpu.memory_space<vmem>>, vector<31x2xf32>
    %cst_52 = arith.constant dense<0.000000e+00> : vector<3x2xf32>
    %245 = tpu.matmul %243, %244, %cst_52 {dimension_numbers = #tpu.dot_dimension_numbers<[1], [0], [0], [1], [0, 0, 1, 1], [], []>} : vector<3x31xf32>, vector<31x2xf32>, vector<3x2xf32> -> vector<3x2xf32>
    %c160 = arith.constant 160 : index
    %c0_53 = arith.constant 0 : index
    %246 = vector.load %arg2[%c160, %c0_53] : memref<168x56xf32, #tpu.memory_space<vmem>>, vector<3x16xf32>
    %247 = vector.extract_strided_slice %246 {offsets = [0, 0], sizes = [3, 10], strides = [1, 1]} : vector<3x16xf32> to vector<3x10xf32>
    %248 = vector.extract_strided_slice %246 {offsets = [0, 10], sizes = [3, 5], strides = [1, 1]} : vector<3x16xf32> to vector<3x5xf32>
    %249 = vector.extract_strided_slice %246 {offsets = [0, 15], sizes = [3, 1], strides = [1, 1]} : vector<3x16xf32> to vector<3x1xf32>
    %cst_54 = arith.constant 0.000000e+00 : f32
    %250 = vector.broadcast %cst_54 : f32 to vector<10x2xf32>
    %251 = arith.maximumf %237, %250 : vector<10x2xf32>
    %cst_55 = arith.constant dense<0.000000e+00> : vector<3x2xf32>
    %252 = tpu.matmul %247, %251, %cst_55 {dimension_numbers = #tpu.dot_dimension_numbers<[1], [0], [0], [1], [0, 0, 1, 1], [], []>} : vector<3x10xf32>, vector<10x2xf32>, vector<3x2xf32> -> vector<3x2xf32>
    %253 = arith.addf %245, %252 : vector<3x2xf32>
    %cst_56 = arith.constant 0.000000e+00 : f32
    %254 = vector.broadcast %cst_56 : f32 to vector<5x2xf32>
    %255 = arith.maximumf %238, %254 : vector<5x2xf32>
    %cst_57 = arith.constant dense<0.000000e+00> : vector<3x2xf32>
    %256 = tpu.matmul %248, %255, %cst_57 {dimension_numbers = #tpu.dot_dimension_numbers<[1], [0], [0], [1], [0, 0, 1, 1], [], []>} : vector<3x5xf32>, vector<5x2xf32>, vector<3x2xf32> -> vector<3x2xf32>
    %257 = arith.addf %253, %256 : vector<3x2xf32>
    %258 = vector.broadcast %249 : vector<3x1xf32> to vector<3x2xf32>
    %259 = arith.addf %257, %258 : vector<3x2xf32>
    %c0_58 = arith.constant 0 : index
    %c0_59 = arith.constant 0 : index
    %260 = vector.load %arg4[%c0_58, %c0_59] : memref<3x2xf32, #tpu.memory_space<vmem>>, vector<3x2xf32>
    tpu.vector_store %arg4[%c0_58, %c0_59], %259 {strides = array<i32>} : memref<3x2xf32, #tpu.memory_space<vmem>>, vector<3x2xf32>,
    return
  }
  func.func @transform_0(%arg0: i32) -> (i32, i32) {
    %c0_i32 = arith.constant 0 : i32
    %c0_i32_0 = arith.constant 0 : i32
    %c0_i32_1 = arith.constant 0 : i32
    return %c0_i32, %c0_i32_0 : i32, i32
  }
  func.func @transform_1(%arg0: i32) -> (i32, i32) {
    %c0_i32 = arith.constant 0 : i32
    %c0_i32_0 = arith.constant 0 : i32
    %c0_i32_1 = arith.constant 0 : i32
    return %c0_i32, %c0_i32_0 : i32, i32
  }
  func.func @transform_2(%arg0: i32) -> (i32, i32, i32) {
    %c0_i32 = arith.constant 0 : i32
    %c0_i32_0 = arith.constant 0 : i32
    %c0_i32_1 = arith.constant 0 : i32
    %c0_i32_2 = arith.constant 0 : i32
    return %c0_i32, %c0_i32_0, %c0_i32_1 : i32, i32, i32
  }
  func.func @transform_3(%arg0: i32) -> (i32, i32) {
    %c0_i32 = arith.constant 0 : i32
    %c0_i32_0 = arith.constant 0 : i32
    %c0_i32_1 = arith.constant 0 : i32
    return %c0_i32, %c0_i32_0 : i32, i32
  }
}

</mosaic_0001>

<bundles_post_ra>
// kernel: inv_sales_net_forward.1
= control target key start
LH: loop header
LB: loop body
LE: loop exit
PB: predicated region body
PF: predicated region fallthrough
CT: control target
= control target key end

     0   :  { %v2697_v1 = vmov 0.0|0.0   ;;  %vm2698_vm0 = vmmov 0   ;;  %v2699_v2 = vmov 0.0   ;;  %s2700_s14 = smov 127   ;;  %v2701_v4 = vmov 24   ;;  %s2702_s17 = smov 126   ;;  %s3174_s0 = inlined_call_operand.vmem [shape: f32[24,40], index: 0, kind: input, shape index: {}]   ;;  %s3175_s1 = inlined_call_operand.vmem [shape: f32[168,56], index: 1, kind: input, shape index: {}]   ;;  %s3176_s2 = inlined_call_operand.vmem [shape: f32[3,10,31], index: 2, kind: input, shape index: {}]   ;;  %s3177_s3 = inlined_call_operand.vmem [shape: f32[3,2], index: 3, kind: output, shape index: {}]  }
   0x1   :  { %v14_v0 = vld [vmem:[%s3174_s0] sm:$0xff]  ;;  %2403 = vmatprep.subr.bf16.mxu0 %v2697_v1  ;;  %2249 = vmatprep.mubr.msk.f32.mxu0 %vm2698_vm0, %v2699_v2  ;;  %vm28_vm1 = vcmask 195584   ;;  %v2703_v13 = vmov 48   ;;  %s2704_s18 = smov 124   ;;  %s2705_s19 = smov 125   ;;  %v102_v14 = vld [vmem:[%s3175_s1 + $0x8] sm:$0xff] }
   0x2   :  { %17 = vrot.lane.b32.xlu0 %v14_v0, %s2700_s14  ;;  %v15_v3 = vld [vmem:[%s3175_s1] sm:$0xff]  ;;  %2487 = vset.pattern.permute.xlu1 %v2701_v4  ;;  %s2706_s22 = smov 123   ;;  %vm124_vm2 = vcmask 392192   ;;  %v198_v24 = vld [vmem:[%s3175_s1 + $0x10] sm:$0xff]  ;;  %v301_v30 = vld [vmem:[%s3175_s1 + $0x28] sm:$0xff]  ;;  %v2707_v31 = vmov 16  }
   0x3   :  { %25 = vperm.xlu1 %2487, %v15_v3   ;;  %2406 = vmatprep.subr.bf16.mxu1 %v2697_v1  ;;  %v300_v29 = vld [vmem:[%s3175_s1 + $0x20] sm:$0xff]  ;;  %vm342_vm3 = vcmask 130048   ;;  %v2782_v32 = vld [vmem:[%s3175_s1 + $0x50] sm:$0xff]  ;;  %v2787_v33 = vld [vmem:[%s3175_s1 + $0x58] sm:$0xff]  ;;  %s2711_s30 = smov 122   ;;  %s2712_s4 = smov 8  }
   0x4   :  { %2264 = vmatprep.mubr.msk.f32.mxu1 %vm2698_vm0, %v2699_v2  ;;  %2488 = vset.pattern.permute.xlu0 %v2703_v13  ;;  %v302_v34 = vld [vmem:[%s3175_s1 + $0x30] sm:$0xff]  ;;  %v303_v35 = vld [vmem:[%s3175_s1 + $0x38] sm:$0xff]  ;;  %v2802_v36 = vld [vmem:[%s3175_s1 + $0x68] sm:$0xff]  ;;  %s2713_s5 = smov 120   ;;  %s2714_s6 = smov 10   ;;  %vm1894_vm4 = vcmask 1046528  }
   0x5   :  { %v2807_v37 = vld [vmem:[%s3175_s1 + $0x60] sm:$0xff]  ;;  %v305_v39 = vld [vmem:[%s3175_s1 + $0x48] sm:$0xff]  ;;  %v2820_v40 = vld [vmem:[%s3175_s1 + $0x78] sm:$0xff]  ;;  %s2715_s7 = smov 118   ;;  %s2716_s20 = smov 12   ;;  %vm2719_vm5 = vmmov 1  }
   0x6   :  { %20 = vrot.lane.b32.xlu0 %v14_v0, %s2702_s17  ;;  %v304_v38 = vld [vmem:[%s3175_s1 + $0x40] sm:$0xff]  ;;  %v2825_v41 = vld [vmem:[%s3175_s1 + $0x70] sm:$0xff]  ;;  %v298_v44 = vld [vmem:[%s3174_s0 + $0x8] sm:$0xff]  ;;  %s2717_s21 = smov 116   ;;  %vm1767_vm7 = vcmask 246784   ;;  %vm1765_vm8 = vcmask 252928  }
   0x7   :  { %2490 = vset.pattern.permute.xlu1 %v2707_v31  ;;  %v299_v45 = vld [vmem:[%s3174_s0 + $0x10] sm:$0xff]  ;;  %v199_v48 = vld [vmem:[%s3175_s1 + $0x18] sm:$0x3]  ;;  %s2708_s0 = smov 2   ;;  %vm2460_vm6 = vmpackc.low %vm1894_vm4, %vm2719_vm5  ;;  %vm1888_vm9 = vcmask 1041409   ;;  %vm1890_vm10 = vcmask 1042434  }
   0x8   :  { %v2419_v47 = vpack.c.bf16 %v299_v45, %v298_v44  ;;  %vm1812_vm11 = vcmask 1041408   ;;  %vm1808_vm13 = vcmask 80896   ;;  %vm1978_vm14 = vcmask 1044480  }
   0x9   :  { %vm2453_vm12 = vmpackc.low %vm1812_vm11, %vm2719_vm5  ;;  %vm1975_vm15 = vcmask 39936  }
  0x74   :  { %v18_v5 = vpop.permute.xlu0 %17 }
  0x75   :  { %v2404_v6 = vpack.c.bf16 %v18_v5, %v14_v0 }
  0x77   :  { %2405 = vmatpush3.bf16.msra.mxu0 %v2404_v6 }
  0x78   :  { %2247 = vmatprep.subr.mxu0 %v2699_v2  ;;  %v21_v7 = vpop.permute.xlu0 %20 }
  0x7b   :  { %2248 = vmatpush3.msra.mxu0 %v21_v7 }
  0x7c   :  { %2250 = vmatmul.mubr.msk.f32.vlgmr.msra.gmra.mrb[0].mxu0 %vm28_vm1, %v15_v3 }
  0x7d   :  { %2273 = vmatprep.mubr.msk.f32.mxu0 %vm28_vm1, %v198_v24 }
  0x82   :  { %v26_v8 = vpop.permute.xlu1 %25 }
 0x14f   :  { %v97_v9 = vpop.f32.mrb[0].mxu0 }
 0x150   :  { %v98_v10 = vadd.f32 %v97_v9, %v26_v8  ;;  %v2251_v11 = vpop.f32.mrb[1].mxu0 }
 0x152   :  { %v101_v12 = vmax.f32 %v98_v10, 0.0 }
 0x154   :  { %107 = vrot.lane.b32.xlu0 %v101_v12, %s2702_s17  ;;  %104 = vrot.lane.b32.xlu1 %v101_v12, %s2700_s14 }
 0x158   :  { %113 = vrot.lane.b32.xlu0 %v101_v12, %s2704_s18  ;;  %110 = vrot.lane.b32.xlu1 %v101_v12, %s2705_s19 }
 0x15c   :  { %116 = vrot.lane.b32.xlu1 %v101_v12, %s2706_s22  ;;  %121 = vperm.xlu0 %2488, %v102_v14   ;;  %s2718_s22 = smov 14  }
 0x160   :  { %2489 = vset.pattern.permute.xlu0 %v2707_v31 }
 0x161   :  { %314 = vperm.xlu0 %2489, %v300_v29  }
 0x165   :  { %457 = vperm.xlu0 %2489, %v2787_v33  }
 0x169   :  { %329 = vperm.xlu0 %2489, %v303_v35  }
 0x16d   :  { %467 = vperm.xlu0 %2489, %v2802_v36  }
 0x171   :  { %339 = vperm.xlu0 %2489, %v305_v39  }
 0x175   :  { %505 = vperm.xlu0 %2489, %v2820_v40  }
 0x179   :  { %2522 = vset.pattern.permute.xlu0 %v2701_v4 }
 0x1c6   :  { %v105_v15 = vpop.permute.xlu1 %104  ;;  %v108_v17 = vpop.permute.xlu0 %107 }
 0x1c7   :  { %v2407_v16 = vpack.c.bf16 %v105_v15, %v101_v12 }
 0x1c9   :  { %2408 = vmatpush3.bf16.msra.mxu1 %v2407_v16 }
 0x1ca   :  { %v111_v18 = vpop.permute.xlu1 %110  ;;  %2409 = vmatprep.subr.bf16.mxu1 %v2697_v1  ;;  %v114_v20 = vpop.permute.xlu0 %113 }
 0x1cb   :  { %v2410_v19 = vpack.c.bf16 %v111_v18, %v108_v17 }
 0x1cd   :  { %2411 = vmatpush3.bf16.msra.mxu1 %v2410_v19 }
 0x1ce   :  { %v117_v21 = vpop.permute.xlu1 %116  ;;  %2412 = vmatprep.subr.bf16.mxu1 %v2697_v1 }
 0x1cf   :  { %v2413_v22 = vpack.c.bf16 %v117_v21, %v114_v20 }
 0x1d1   :  { %2414 = vmatpush3.bf16.msra.mxu1 %v2413_v22 }
 0x1d4   :  { %2265 = vmatmul.mubr.msk.f32.vlgmr.msra.gmra.mrb[0].mxu1 %vm124_vm2, %v102_v14 }
 0x1d5   :  { %2293 = vmatprep.mubr.msk.f32.mxu1 %vm342_vm3, %v2782_v32 }
 0x1db   :  { %v122_v23 = vpop.permute.xlu0 %121 }
 0x1e0   :  { %v315_v49 = vpop.permute.xlu0 %314 }
 0x1e4   :  { %v2849_v51 = vpop.permute.xlu0 %457 }
 0x1e8   :  { %v330_v55 = vpop.permute.xlu0 %329 }
 0x1ec   :  { %v2867_v5 = vpop.permute.xlu0 %467 }
 0x1f0   :  { %v340_v20 = vpop.permute.xlu0 %339 }
 0x2a7   :  { %v193_v25 = vpop.f32.mrb[0].mxu1 }
 0x2a8   :  { %v194_v26 = vadd.f32 %v193_v25, %v122_v23  ;;  %v2266_v27 = vpop.f32.mrb[1].mxu1 }
 0x2aa   :  { %v197_v28 = vmax.f32 %v194_v26, 0.0  ;;  %v2877_v26 = vpop.permute.xlu0 %505 }
 0x2ac   :  { %201 = vrot.lane.b32.xlu1 %v197_v28, %s2700_s14 }
 0x2b0   :  { %204 = vrot.lane.b32.xlu1 %v197_v28, %s2702_s17 }
 0x2b4   :  { %319 = vperm.xlu1 %2490, %v301_v30  }
 0x2b8   :  { %452 = vperm.xlu1 %2490, %v2782_v32  }
 0x2bc   :  { %324 = vperm.xlu1 %2490, %v302_v34  }
 0x2c0   :  { %462 = vperm.xlu1 %2490, %v2807_v37  }
 0x2c4   :  { %334 = vperm.xlu1 %2490, %v304_v38  }
 0x2c8   :  { %500 = vperm.xlu1 %2490, %v2825_v41  }
 0x2cc   :  { %2521 = vset.pattern.permute.xlu1 %v2701_v4 }
 0x31e   :  { %v202_v42 = vpop.permute.xlu1 %201 }
 0x31f   :  { %v2415_v43 = vpack.c.bf16 %v202_v42, %v197_v28 }
 0x321   :  { %2416 = vmatprep.subr.bf16.mxu0 %v2415_v43 }
 0x322   :  { %2418 = vmatpush3.bf16.msra.mxu0 %v2415_v43  ;;  %v205_v46 = vpop.permute.xlu1 %204 }
 0x323   :  { %2271 = vmatprep.subr.mxu0 %v205_v46 }
 0x326   :  { %2272 = vmatpush3.msra.mxu0 %v205_v46 }
 0x327   :  { %2274 = vmatmul.mubr.msk.f32.vlgmr.msra.gmra.mrb[2].mxu0 %vm28_vm1, %v199_v48  ;;  %2420 = vmatprep.subr.bf16.mxu0 %v2419_v47  ;;  %vm2057_vm1 = vcmask 10240  }
 0x328   :  { %2422 = vmatpush3.bf16.msra.mxu0 %v2419_v47  ;;  %2280 = vmatprep.mubr.msk.f32.mxu0 %vm342_vm3, %v300_v29 }
 0x32b   :  { %2281 = vmatmul.mubr.msk.f32.vlgmr.msra.gmra.mrb[4].mxu0 %vm342_vm3, %v301_v30 }
 0x32c   :  { %2283 = vmatprep.mubr.msk.f32.mxu0 %vm342_vm3, %v302_v34 }
 0x32f   :  { %2284 = vmatmul.mubr.msk.f32.gmra.mrb[6].mxu0 %vm342_vm3, %v303_v35 }
 0x330   :  { %2286 = vmatprep.mubr.msk.f32.mxu0 %vm342_vm3, %v304_v38 }
 0x333   :  { %2287 = vmatmul.mubr.msk.f32.gmra.mrb[8].mxu0 %vm342_vm3, %v305_v39  ;;  %v320_v50 = vpop.permute.xlu1 %319 }
 0x334   :  { %2306 = vmatprep.mubr.msk.f32.mxu0 %vm342_vm3, %v2782_v32 }
 0x337   :  { %v2851_v52 = vpop.permute.xlu1 %452 }
 0x33b   :  { %v325_v57 = vpop.permute.xlu1 %324 }
 0x33f   :  { %v2871_v8 = vpop.permute.xlu1 %462 }
 0x343   :  { %v335_v22 = vpop.permute.xlu1 %334 }
 0x347   :  { %v2879_v28 = vpop.permute.xlu1 %500 }
 0x3fa   :  { %v2853_v53 = vpop.f32.mrb[2].mxu0 }
 0x3fb   :  { %v2855_v54 = vpop.f32.mrb[3].mxu0 }
 0x3fe   :  { %v2282_v56 = vpop.f32.mrb[4].mxu0 }
 0x3ff   :  { %v2857_v58 = vadd.f32 %v2282_v56, %v320_v50  ;;  %v421_v59 = vpop.f32.mrb[5].mxu0 }
 0x400   :  { %v2859_v60 = vadd.f32 %v421_v59, %v315_v49 }
 0x401   :  { %v471_v61 = vadd.f32 %v2849_v51, %v2857_v58 }
 0x402   :  { %v470_v62 = vadd.f32 %v2851_v52, %v2859_v60  ;;  %v2285_v63 = vpop.f32.mrb[6].mxu0 }
 0x403   :  { %v2074_v0 = vmul.f32 -1.442695, %v471_v61  ;;  %v2865_v3 = vadd.f32 %v2285_v63, %v330_v55  ;;  %v431_v4 = vpop.f32.mrb[7].mxu0 }
 0x404   :  { %v2073_v6 = vmul.f32 -1.442695, %v470_v62  ;;  %v2869_v7 = vadd.f32 %v431_v4, %v325_v57 }
 0x405   :  { %2530 = vpow2.f32 %v2074_v0  ;;  %v473_v9 = vadd.f32 %v2867_v5, %v2865_v3 }
 0x406   :  { %2532 = vpow2.f32 %v2073_v6  ;;  %v2288_v10 = vpop.f32.mrb[8].mxu0  ;;  %v472_v11 = vadd.f32 %v2871_v8, %v2869_v7 }
 0x407   :  { %v441_v12 = vpop.f32.mrb[9].mxu0  ;;  %v2076_v13 = vmul.f32 -1.442695, %v473_v9  ;;  %v2881_v29 = vadd.f32 %v2288_v10, %v340_v20 }
 0x408   :  { %v2075_v14 = vmul.f32 -1.442695, %v472_v11  ;;  %v2884_v31 = vadd.f32 %v441_v12, %v335_v22 }
 0x409   :  { %2534 = vpow2.f32 %v2076_v13 }
 0x40a   :  { %2536 = vpow2.f32 %v2075_v14 }
 0x40f   :  { %v2531_v15 = vpop.eup %2530 }
 0x410   :  { %v2533_v16 = vpop.eup %2532  ;;  %v487_v17 = vadd.f32 1.0, %v2531_v15 }
 0x411   :  { %v486_v18 = vadd.f32 1.0, %v2533_v16 }
 0x412   :  { %2538 = vrcp.f32 %v487_v17 }
 0x413   :  { %2540 = vrcp.f32 %v486_v18  ;;  %v2535_v19 = vpop.eup %2534 }
 0x414   :  { %v2537_v21 = vpop.eup %2536  ;;  %v489_v23 = vadd.f32 1.0, %v2535_v19 }
 0x415   :  { %v488_v24 = vadd.f32 1.0, %v2537_v21 }
 0x416   :  { %2542 = vrcp.f32 %v489_v23 }
 0x417   :  { %2544 = vrcp.f32 %v488_v24 }
 0x41c   :  { %v2539_v25 = vpop.eup %2538 }
 0x41d   :  { %v2541_v27 = vpop.eup %2540  ;;  %v509_v30 = vmul.f32 %v2539_v25, %v2877_v26 }
 0x41e   :  { %v508_v34 = vmul.f32 %v2541_v27, %v2879_v28 }
 0x41f   :  { %v511_v35 = vadd.f32 %v509_v30, %v2881_v29 }
 0x420   :  { %v510_v38 = vadd.f32 %v508_v34, %v2884_v31  ;;  %v2543_v39 = vpop.eup %2542 }
 0x421   :  { %2546 = vtanh.f32 %v511_v35  ;;  %v2545_v42 = vpop.eup %2544  ;;  %v515_v43 = vsub.f32 1.0, %v2543_v39  ;;  %v519_v48 = vmul.f32 0.0, %v2543_v39 }
 0x422   :  { %2548 = vtanh.f32 %v510_v38  ;;  %v514_v45 = vsub.f32 1.0, %v2545_v42  ;;  %v518_v50 = vmul.f32 0.0, %v2545_v42 }
 0x42b   :  { %v2547_v44 = vpop.eup %2546 }
 0x42c   :  { %v2549_v46 = vpop.eup %2548  ;;  %v517_v47 = vmul.f32 %v2547_v44, %v515_v43 }
 0x42d   :  { %v516_v49 = vmul.f32 %v2549_v46, %v514_v45 }
 0x42e   :  { %v521_v55 = vadd.f32 %v519_v48, %v517_v47 }
 0x42f   :  { %v520_v56 = vadd.f32 %v518_v50, %v516_v49 }
 0x431   :  { %v2423_v57 = vpack.c.bf16 %v521_v55, %v520_v56 }
 0x433   :  { %2424 = vmatprep.subr.bf16.mxu1 %v2423_v57 }
 0x434   :  { %2426 = vmatpush3.bf16.msra.mxu1 %v2423_v57 }
 0x437   :  { %2294 = vmatmul.mubr.msk.f32.vlgmr.msra.gmra.mrb[2].mxu1 %vm342_vm3, %v2787_v33 }
 0x438   :  { %2296 = vmatprep.mubr.msk.f32.mxu1 %vm342_vm3, %v2807_v37 }
 0x43b   :  { %2297 = vmatmul.mubr.msk.f32.gmra.mrb[4].mxu1 %vm342_vm3, %v2802_v36 }
 0x43c   :  { %2299 = vmatprep.mubr.msk.f32.mxu1 %vm342_vm3, %v2825_v41 }
 0x43f   :  { %2300 = vmatmul.mubr.msk.f32.gmra.mrb[6].mxu1 %vm342_vm3, %v2820_v40 }
 0x440   :  { %2319 = vmatprep.mubr.msk.f32.mxu1 %vm342_vm3, %v2782_v32 }
 0x50a   :  { %v2295_v59 = vpop.f32.mrb[2].mxu1 }
 0x50b   :  { %v606_v61 = vadd.f32 %v2295_v59, %v2849_v51  ;;  %v600_v62 = vpop.f32.mrb[3].mxu1 }
 0x50c   :  { %v601_v63 = vadd.f32 %v600_v62, %v2851_v52 }
 0x50d   :  { %635 = vrot.lane.b32.xlu0 %v606_v61, %s2708_s0 }
 0x50e   :  { %v2298_v0 = vpop.f32.mrb[4].mxu1  ;;  %633 = vrot.lane.b32.xlu1 %v601_v63, %s2708_s0 }
 0x50f   :  { %v616_v4 = vadd.f32 %v2298_v0, %v2867_v5  ;;  %v610_v6 = vpop.f32.mrb[5].mxu1 }
 0x510   :  { %v611_v9 = vadd.f32 %v610_v6, %v2871_v8 }
 0x511   :  { %639 = vrot.lane.b32.xlu0 %v616_v4, %s2708_s0 }
 0x512   :  { %v2301_v10 = vpop.f32.mrb[6].mxu1  ;;  %637 = vrot.lane.b32.xlu1 %v611_v9, %s2708_s0 }
 0x513   :  { %v626_v11 = vadd.f32 %v2301_v10, %v2877_v26  ;;  %v620_v12 = vpop.f32.mrb[7].mxu1 }
 0x514   :  { %v621_v13 = vadd.f32 %v620_v12, %v2879_v28 }
 0x515   :  { %677 = vrot.lane.b32.xlu0 %v626_v11, %s2708_s0 }
 0x516   :  { %675 = vrot.lane.b32.xlu1 %v621_v13, %s2708_s0 }
 0x519   :  { %695 = vrot.lane.b32.xlu0 %v521_v55, %s2708_s0 }
 0x51a   :  { %693 = vrot.lane.b32.xlu1 %v520_v56, %s2708_s0 }
 0x57f   :  { %v636_v14 = vpop.permute.xlu0 %635 }
 0x580   :  { %v646_v15 = vadd.f32 %v636_v14, %v2857_v58  ;;  %v634_v16 = vpop.permute.xlu1 %633 }
 0x581   :  { %v645_v17 = vadd.f32 %v634_v16, %v2859_v60 }
 0x582   :  { %v2084_v18 = vmul.f32 -1.442695, %v646_v15 }
 0x583   :  { %v2083_v19 = vmul.f32 -1.442695, %v645_v17  ;;  %v640_v20 = vpop.permute.xlu0 %639 }
 0x584   :  { %2550 = vpow2.f32 %v2084_v18  ;;  %v648_v21 = vadd.f32 %v640_v20, %v2865_v3  ;;  %v638_v22 = vpop.permute.xlu1 %637 }
 0x585   :  { %2552 = vpow2.f32 %v2083_v19  ;;  %v647_v23 = vadd.f32 %v638_v22, %v2869_v7 }
 0x586   :  { %v2086_v24 = vmul.f32 -1.442695, %v648_v21 }
 0x587   :  { %v2085_v25 = vmul.f32 -1.442695, %v647_v23  ;;  %v678_v45 = vpop.permute.xlu0 %677 }
 0x588   :  { %2554 = vpow2.f32 %v2086_v24  ;;  %v676_v48 = vpop.permute.xlu1 %675 }
 0x589   :  { %2556 = vpow2.f32 %v2085_v25 }
 0x58b   :  { %v696_v62 = vpop.permute.xlu0 %695 }
 0x58c   :  { %v694_v9 = vpop.permute.xlu1 %693 }
 0x58e   :  { %v2551_v27 = vpop.eup %2550 }
 0x58f   :  { %v2553_v30 = vpop.eup %2552  ;;  %v662_v34 = vadd.f32 1.0, %v2551_v27 }
 0x590   :  { %v661_v35 = vadd.f32 1.0, %v2553_v30 }
 0x591   :  { %2558 = vrcp.f32 %v662_v34 }
 0x592   :  { %2560 = vrcp.f32 %v661_v35  ;;  %v2555_v38 = vpop.eup %2554 }
 0x593   :  { %v2557_v39 = vpop.eup %2556  ;;  %v664_v42 = vadd.f32 1.0, %v2555_v38 }
 0x594   :  { %v663_v43 = vadd.f32 1.0, %v2557_v39 }
 0x595   :  { %2562 = vrcp.f32 %v664_v42 }
 0x596   :  { %2564 = vrcp.f32 %v663_v43 }
 0x59b   :  { %v2559_v44 = vpop.eup %2558 }
 0x59c   :  { %v2561_v46 = vpop.eup %2560  ;;  %v682_v47 = vmul.f32 %v2559_v44, %v678_v45 }
 0x59d   :  { %v681_v49 = vmul.f32 %v2561_v46, %v676_v48 }
 0x59e   :  { %v684_v50 = vadd.f32 %v682_v47, %v2881_v29 }
 0x59f   :  { %v683_v55 = vadd.f32 %v681_v49, %v2884_v31  ;;  %v2563_v56 = vpop.eup %2562 }
 0x5a0   :  { %2566 = vtanh.f32 %v684_v50  ;;  %v2565_v57 = vpop.eup %2564  ;;  %v688_v59 = vsub.f32 1.0, %v2563_v56  ;;  %v700_v6 = vmul.f32 %v2563_v56, %v696_v62 }
 0x5a1   :  { %2568 = vtanh.f32 %v683_v55  ;;  %v687_v63 = vsub.f32 1.0, %v2565_v57  ;;  %v699_v11 = vmul.f32 %v2565_v57, %v694_v9 }
 0x5aa   :  { %v2567_v61 = vpop.eup %2566 }
 0x5ab   :  { %v2569_v0 = vpop.eup %2568  ;;  %v690_v4 = vmul.f32 %v2567_v61, %v688_v59 }
 0x5ac   :  { %v689_v10 = vmul.f32 %v2569_v0, %v687_v63 }
 0x5ad   :  { %v702_v12 = vadd.f32 %v700_v6, %v690_v4 }
 0x5ae   :  { %v701_v13 = vadd.f32 %v699_v11, %v689_v10 }
 0x5b0   :  { %v2491_v14 = vpack.i.bf16 %v702_v12, %v701_v13 }
 0x5b2   :  { %2492 = vrot.lane.b32.xlu1 %v2491_v14, %s2702_s17  ;;  %s2709_s17 = smov 4  }
 0x624   :  { %v2493_v15 = vpop.permute.xlu1 %2492 }
 0x625   :  { %v2495_v16 = vunpack.i.h.bf16 %v2493_v15  ;;  %v2494_v17 = vunpack.i.l.bf16 %v2493_v15 }
 0x627   :  { %v2427_v18 = vpack.c.bf16 %v2495_v16, %v2494_v17 }
 0x629   :  { %2428 = vmatprep.subr.bf16.mxu0 %v2427_v18 }
 0x62a   :  { %2430 = vmatpush3.bf16.msra.mxu0 %v2427_v18 }
 0x62d   :  { %2307 = vmatmul.mubr.msk.f32.vlgmr.msra.gmra.mrb[10].mxu0 %vm342_vm3, %v2787_v33 }
 0x62e   :  { %2309 = vmatprep.mubr.msk.f32.mxu0 %vm342_vm3, %v2807_v37 }
 0x631   :  { %2310 = vmatmul.mubr.msk.f32.gmra.mrb[12].mxu0 %vm342_vm3, %v2802_v36 }
 0x632   :  { %2312 = vmatprep.mubr.msk.f32.mxu0 %vm342_vm3, %v2825_v41 }
 0x635   :  { %2313 = vmatmul.mubr.msk.f32.gmra.mrb[14].mxu0 %vm342_vm3, %v2820_v40 }
 0x636   :  { %2332 = vmatprep.mubr.msk.f32.mxu0 %vm342_vm3, %v2782_v32 }
 0x700   :  { %v2308_v19 = vpop.f32.mrb[10].mxu0 }
 0x701   :  { %v783_v20 = vadd.f32 %v2308_v19, %v2849_v51  ;;  %v777_v21 = vpop.f32.mrb[11].mxu0 }
 0x702   :  { %v778_v22 = vadd.f32 %v777_v21, %v2851_v52 }
 0x703   :  { %812 = vrot.lane.b32.xlu1 %v783_v20, %s2709_s17 }
 0x704   :  { %v2311_v23 = vpop.f32.mrb[12].mxu0  ;;  %810 = vrot.lane.b32.xlu0 %v778_v22, %s2709_s17 }
 0x705   :  { %v793_v24 = vadd.f32 %v2311_v23, %v2867_v5  ;;  %v787_v25 = vpop.f32.mrb[13].mxu0 }
 0x706   :  { %v788_v27 = vadd.f32 %v787_v25, %v2871_v8 }
 0x707   :  { %816 = vrot.lane.b32.xlu1 %v793_v24, %s2709_s17 }
 0x708   :  { %v2314_v30 = vpop.f32.mrb[14].mxu0  ;;  %814 = vrot.lane.b32.xlu0 %v788_v27, %s2709_s17 }
 0x709   :  { %v803_v34 = vadd.f32 %v2314_v30, %v2877_v26  ;;  %v797_v35 = vpop.f32.mrb[15].mxu0 }
 0x70a   :  { %v798_v38 = vadd.f32 %v797_v35, %v2879_v28 }
 0x70b   :  { %854 = vrot.lane.b32.xlu1 %v803_v34, %s2709_s17 }
 0x70c   :  { %852 = vrot.lane.b32.xlu0 %v798_v38, %s2709_s17 }
 0x70f   :  { %870 = vrot.lane.b32.xlu1 %v702_v12, %s2708_s0 }
 0x710   :  { %868 = vrot.lane.b32.xlu0 %v701_v13, %s2708_s0 }
 0x775   :  { %v813_v39 = vpop.permute.xlu1 %812 }
 0x776   :  { %v823_v42 = vadd.f32 %v813_v39, %v2857_v58  ;;  %v811_v43 = vpop.permute.xlu0 %810 }
 0x777   :  { %v822_v44 = vadd.f32 %v811_v43, %v2859_v60 }
 0x778   :  { %v2094_v45 = vmul.f32 -1.442695, %v823_v42 }
 0x779   :  { %v2093_v46 = vmul.f32 -1.442695, %v822_v44  ;;  %v817_v47 = vpop.permute.xlu1 %816 }
 0x77a   :  { %2570 = vpow2.f32 %v2094_v45  ;;  %v825_v48 = vadd.f32 %v817_v47, %v2865_v3  ;;  %v815_v49 = vpop.permute.xlu0 %814 }
 0x77b   :  { %2572 = vpow2.f32 %v2093_v46  ;;  %v824_v50 = vadd.f32 %v815_v49, %v2869_v7 }
 0x77c   :  { %v2096_v55 = vmul.f32 -1.442695, %v825_v48 }
 0x77d   :  { %v2095_v56 = vmul.f32 -1.442695, %v824_v50  ;;  %v855_v10 = vpop.permute.xlu1 %854 }
 0x77e   :  { %2574 = vpow2.f32 %v2096_v55  ;;  %v853_v13 = vpop.permute.xlu0 %852 }
 0x77f   :  { %2576 = vpow2.f32 %v2095_v56 }
 0x781   :  { %v871_v21 = vpop.permute.xlu1 %870 }
 0x782   :  { %v869_v27 = vpop.permute.xlu0 %868 }
 0x784   :  { %v2571_v57 = vpop.eup %2570 }
 0x785   :  { %v2573_v59 = vpop.eup %2572  ;;  %v839_v61 = vadd.f32 1.0, %v2571_v57 }
 0x786   :  { %v838_v62 = vadd.f32 1.0, %v2573_v59 }
 0x787   :  { %2578 = vrcp.f32 %v839_v61 }
 0x788   :  { %2580 = vrcp.f32 %v838_v62  ;;  %v2575_v63 = vpop.eup %2574 }
 0x789   :  { %v2577_v0 = vpop.eup %2576  ;;  %v841_v4 = vadd.f32 1.0, %v2575_v63 }
 0x78a   :  { %v840_v6 = vadd.f32 1.0, %v2577_v0 }
 0x78b   :  { %2582 = vrcp.f32 %v841_v4 }
 0x78c   :  { %2584 = vrcp.f32 %v840_v6 }
 0x791   :  { %v2579_v9 = vpop.eup %2578 }
 0x792   :  { %v2581_v11 = vpop.eup %2580  ;;  %v859_v12 = vmul.f32 %v2579_v9, %v855_v10 }
 0x793   :  { %v858_v14 = vmul.f32 %v2581_v11, %v853_v13 }
 0x794   :  { %v861_v15 = vadd.f32 %v859_v12, %v2881_v29 }
 0x795   :  { %v860_v16 = vadd.f32 %v858_v14, %v2884_v31  ;;  %v2583_v17 = vpop.eup %2582 }
 0x796   :  { %2586 = vtanh.f32 %v861_v15  ;;  %v2585_v18 = vpop.eup %2584  ;;  %v865_v19 = vsub.f32 1.0, %v2583_v17  ;;  %v875_v25 = vmul.f32 %v2583_v17, %v871_v21 }
 0x797   :  { %2588 = vtanh.f32 %v860_v16  ;;  %v864_v22 = vsub.f32 1.0, %v2585_v18  ;;  %v874_v34 = vmul.f32 %v2585_v18, %v869_v27 }
 0x7a0   :  { %v2587_v20 = vpop.eup %2586 }
 0x7a1   :  { %v2589_v23 = vpop.eup %2588  ;;  %v867_v24 = vmul.f32 %v2587_v20, %v865_v19 }
 0x7a2   :  { %v866_v30 = vmul.f32 %v2589_v23, %v864_v22 }
 0x7a3   :  { %v877_v35 = vadd.f32 %v875_v25, %v867_v24 }
 0x7a4   :  { %v876_v38 = vadd.f32 %v874_v34, %v866_v30 }
 0x7a6   :  { %v2496_v39 = vpack.i.bf16 %v877_v35, %v876_v38 }
 0x7a8   :  { %2497 = vrot.lane.b32.xlu0 %v2496_v39, %s2704_s18  ;;  %s2710_s18 = smov 6  }
 0x81a   :  { %v2498_v42 = vpop.permute.xlu0 %2497 }
 0x81b   :  { %v2500_v43 = vunpack.i.h.bf16 %v2498_v42  ;;  %v2499_v44 = vunpack.i.l.bf16 %v2498_v42 }
 0x81d   :  { %v2431_v45 = vpack.c.bf16 %v2500_v43, %v2499_v44 }
 0x81f   :  { %2432 = vmatprep.subr.bf16.mxu1 %v2431_v45 }
 0x820   :  { %2434 = vmatpush3.bf16.msra.mxu1 %v2431_v45 }
 0x823   :  { %2320 = vmatmul.mubr.msk.f32.vlgmr.msra.gmra.mrb[8].mxu1 %vm342_vm3, %v2787_v33 }
 0x824   :  { %2322 = vmatprep.mubr.msk.f32.mxu1 %vm342_vm3, %v2807_v37 }
 0x827   :  { %2323 = vmatmul.mubr.msk.f32.gmra.mrb[10].mxu1 %vm342_vm3, %v2802_v36 }
 0x828   :  { %2325 = vmatprep.mubr.msk.f32.mxu1 %vm342_vm3, %v2825_v41 }
 0x82b   :  { %2326 = vmatmul.mubr.msk.f32.gmra.mrb[12].mxu1 %vm342_vm3, %v2820_v40 }
 0x82c   :  { %2345 = vmatprep.mubr.msk.f32.mxu1 %vm342_vm3, %v2782_v32 }
 0x8f6   :  { %v2321_v46 = vpop.f32.mrb[8].mxu1 }
 0x8f7   :  { %v958_v47 = vadd.f32 %v2321_v46, %v2849_v51  ;;  %v952_v48 = vpop.f32.mrb[9].mxu1 }
 0x8f8   :  { %v953_v49 = vadd.f32 %v952_v48, %v2851_v52 }
 0x8f9   :  { %987 = vrot.lane.b32.xlu0 %v958_v47, %s2710_s18 }
 0x8fa   :  { %v2324_v50 = vpop.f32.mrb[10].mxu1  ;;  %985 = vrot.lane.b32.xlu1 %v953_v49, %s2710_s18 }
 0x8fb   :  { %v968_v55 = vadd.f32 %v2324_v50, %v2867_v5  ;;  %v962_v56 = vpop.f32.mrb[11].mxu1 }
 0x8fc   :  { %v963_v57 = vadd.f32 %v962_v56, %v2871_v8 }
 0x8fd   :  { %991 = vrot.lane.b32.xlu0 %v968_v55, %s2710_s18 }
 0x8fe   :  { %v2327_v59 = vpop.f32.mrb[12].mxu1  ;;  %989 = vrot.lane.b32.xlu1 %v963_v57, %s2710_s18 }
 0x8ff   :  { %v978_v61 = vadd.f32 %v2327_v59, %v2877_v26  ;;  %v972_v62 = vpop.f32.mrb[13].mxu1 }
 0x900   :  { %v973_v63 = vadd.f32 %v972_v62, %v2879_v28 }
 0x901   :  { %1029 = vrot.lane.b32.xlu0 %v978_v61, %s2710_s18 }
 0x902   :  { %1027 = vrot.lane.b32.xlu1 %v973_v63, %s2710_s18 }
 0x905   :  { %1045 = vrot.lane.b32.xlu0 %v877_v35, %s2708_s0 }
 0x906   :  { %1043 = vrot.lane.b32.xlu1 %v876_v38, %s2708_s0 }
 0x96b   :  { %v988_v0 = vpop.permute.xlu0 %987 }
 0x96c   :  { %v998_v4 = vadd.f32 %v988_v0, %v2857_v58  ;;  %v986_v6 = vpop.permute.xlu1 %985 }
 0x96d   :  { %v997_v9 = vadd.f32 %v986_v6, %v2859_v60 }
 0x96e   :  { %v2104_v10 = vmul.f32 -1.442695, %v998_v4 }
 0x96f   :  { %v2103_v11 = vmul.f32 -1.442695, %v997_v9  ;;  %v992_v12 = vpop.permute.xlu0 %991 }
 0x970   :  { %2590 = vpow2.f32 %v2104_v10  ;;  %v1000_v13 = vadd.f32 %v992_v12, %v2865_v3  ;;  %v990_v14 = vpop.permute.xlu1 %989 }
 0x971   :  { %2592 = vpow2.f32 %v2103_v11  ;;  %v999_v15 = vadd.f32 %v990_v14, %v2869_v7 }
 0x972   :  { %v2106_v16 = vmul.f32 -1.442695, %v1000_v13 }
 0x973   :  { %v2105_v17 = vmul.f32 -1.442695, %v999_v15  ;;  %v1030_v30 = vpop.permute.xlu0 %1029 }
 0x974   :  { %2594 = vpow2.f32 %v2106_v16  ;;  %v1028_v38 = vpop.permute.xlu1 %1027 }
 0x975   :  { %2596 = vpow2.f32 %v2105_v17 }
 0x977   :  { %v1046_v48 = vpop.permute.xlu0 %1045 }
 0x978   :  { %v1044_v57 = vpop.permute.xlu1 %1043 }
 0x97a   :  { %v2591_v18 = vpop.eup %2590 }
 0x97b   :  { %v2593_v19 = vpop.eup %2592  ;;  %v1014_v20 = vadd.f32 1.0, %v2591_v18 }
 0x97c   :  { %v1013_v21 = vadd.f32 1.0, %v2593_v19 }
 0x97d   :  { %2598 = vrcp.f32 %v1014_v20 }
 0x97e   :  { %2600 = vrcp.f32 %v1013_v21  ;;  %v2595_v22 = vpop.eup %2594 }
 0x97f   :  { %v2597_v23 = vpop.eup %2596  ;;  %v1016_v24 = vadd.f32 1.0, %v2595_v22 }
 0x980   :  { %v1015_v25 = vadd.f32 1.0, %v2597_v23 }
 0x981   :  { %2602 = vrcp.f32 %v1016_v24 }
 0x982   :  { %2604 = vrcp.f32 %v1015_v25 }
 0x987   :  { %v2599_v27 = vpop.eup %2598 }
 0x988   :  { %v2601_v34 = vpop.eup %2600  ;;  %v1034_v35 = vmul.f32 %v2599_v27, %v1030_v30 }
 0x989   :  { %v1033_v39 = vmul.f32 %v2601_v34, %v1028_v38 }
 0x98a   :  { %v1036_v42 = vadd.f32 %v1034_v35, %v2881_v29 }
 0x98b   :  { %v1035_v43 = vadd.f32 %v1033_v39, %v2884_v31  ;;  %v2603_v44 = vpop.eup %2602 }
 0x98c   :  { %2606 = vtanh.f32 %v1036_v42  ;;  %v2605_v45 = vpop.eup %2604  ;;  %v1040_v46 = vsub.f32 1.0, %v2603_v44  ;;  %v1050_v56 = vmul.f32 %v2603_v44, %v1046_v48 }
 0x98d   :  { %2608 = vtanh.f32 %v1035_v43  ;;  %v1039_v49 = vsub.f32 1.0, %v2605_v45  ;;  %v1049_v61 = vmul.f32 %v2605_v45, %v1044_v57 }
 0x996   :  { %v2607_v47 = vpop.eup %2606 }
 0x997   :  { %v2609_v50 = vpop.eup %2608  ;;  %v1042_v55 = vmul.f32 %v2607_v47, %v1040_v46 }
 0x998   :  { %v1041_v59 = vmul.f32 %v2609_v50, %v1039_v49 }
 0x999   :  { %v1052_v62 = vadd.f32 %v1050_v56, %v1042_v55 }
 0x99a   :  { %v1051_v63 = vadd.f32 %v1049_v61, %v1041_v59 }
 0x99c   :  { %v2501_v0 = vpack.i.bf16 %v1052_v62, %v1051_v63 }
 0x99e   :  { %2502 = vrot.lane.b32.xlu1 %v2501_v0, %s2711_s30 }
 0xa10   :  { %v2503_v4 = vpop.permute.xlu1 %2502 }
 0xa11   :  { %v2505_v6 = vunpack.i.h.bf16 %v2503_v4  ;;  %v2504_v9 = vunpack.i.l.bf16 %v2503_v4 }
 0xa13   :  { %v2435_v10 = vpack.c.bf16 %v2505_v6, %v2504_v9 }
 0xa15   :  { %2436 = vmatprep.subr.bf16.mxu0 %v2435_v10 }
 0xa16   :  { %2438 = vmatpush3.bf16.msra.mxu0 %v2435_v10 }
 0xa19   :  { %2333 = vmatmul.mubr.msk.f32.vlgmr.msra.gmra.mrb[16].mxu0 %vm342_vm3, %v2787_v33 }
 0xa1a   :  { %2335 = vmatprep.mubr.msk.f32.mxu0 %vm342_vm3, %v2807_v37 }
 0xa1d   :  { %2336 = vmatmul.mubr.msk.f32.gmra.mrb[18].mxu0 %vm342_vm3, %v2802_v36 }
 0xa1e   :  { %2338 = vmatprep.mubr.msk.f32.mxu0 %vm342_vm3, %v2825_v41 }
 0xa21   :  { %2339 = vmatmul.mubr.msk.f32.gmra.mrb[20].mxu0 %vm342_vm3, %v2820_v40 }
 0xa22   :  { %2358 = vmatprep.mubr.msk.f32.mxu0 %vm342_vm3, %v2782_v32 }
 0xaec   :  { %v2334_v11 = vpop.f32.mrb[16].mxu0 }
 0xaed   :  { %v1133_v12 = vadd.f32 %v2334_v11, %v2849_v51  ;;  %v1127_v13 = vpop.f32.mrb[17].mxu0 }
 0xaee   :  { %v1128_v14 = vadd.f32 %v1127_v13, %v2851_v52 }
 0xaef   :  { %1162 = vrot.lane.b32.xlu1 %v1133_v12, %s2712_s4 }
 0xaf0   :  { %v2337_v15 = vpop.f32.mrb[18].mxu0  ;;  %1160 = vrot.lane.b32.xlu0 %v1128_v14, %s2712_s4 }
 0xaf1   :  { %v1143_v16 = vadd.f32 %v2337_v15, %v2867_v5  ;;  %v1137_v17 = vpop.f32.mrb[19].mxu0 }
 0xaf2   :  { %v1138_v18 = vadd.f32 %v1137_v17, %v2871_v8 }
 0xaf3   :  { %1166 = vrot.lane.b32.xlu1 %v1143_v16, %s2712_s4 }
 0xaf4   :  { %v2340_v19 = vpop.f32.mrb[20].mxu0  ;;  %1164 = vrot.lane.b32.xlu0 %v1138_v18, %s2712_s4 }
 0xaf5   :  { %v1153_v20 = vadd.f32 %v2340_v19, %v2877_v26  ;;  %v1147_v21 = vpop.f32.mrb[21].mxu0 }
 0xaf6   :  { %v1148_v22 = vadd.f32 %v1147_v21, %v2879_v28 }
 0xaf7   :  { %1204 = vrot.lane.b32.xlu1 %v1153_v20, %s2712_s4 }
 0xaf8   :  { %1202 = vrot.lane.b32.xlu0 %v1148_v22, %s2712_s4 }
 0xafb   :  { %1220 = vrot.lane.b32.xlu1 %v1052_v62, %s2708_s0 }
 0xafc   :  { %1218 = vrot.lane.b32.xlu0 %v1051_v63, %s2708_s0 }
 0xb61   :  { %v1163_v23 = vpop.permute.xlu1 %1162 }
 0xb62   :  { %v1173_v24 = vadd.f32 %v1163_v23, %v2857_v58  ;;  %v1161_v25 = vpop.permute.xlu0 %1160 }
 0xb63   :  { %v1172_v27 = vadd.f32 %v1161_v25, %v2859_v60 }
 0xb64   :  { %v2114_v30 = vmul.f32 -1.442695, %v1173_v24 }
 0xb65   :  { %v2113_v34 = vmul.f32 -1.442695, %v1172_v27  ;;  %v1167_v35 = vpop.permute.xlu1 %1166 }
 0xb66   :  { %2610 = vpow2.f32 %v2114_v30  ;;  %v1175_v38 = vadd.f32 %v1167_v35, %v2865_v3  ;;  %v1165_v39 = vpop.permute.xlu0 %1164 }
 0xb67   :  { %2612 = vpow2.f32 %v2113_v34  ;;  %v1174_v42 = vadd.f32 %v1165_v39, %v2869_v7 }
 0xb68   :  { %v2116_v43 = vmul.f32 -1.442695, %v1175_v38 }
 0xb69   :  { %v2115_v44 = vmul.f32 -1.442695, %v1174_v42  ;;  %v1205_v59 = vpop.permute.xlu1 %1204 }
 0xb6a   :  { %2614 = vpow2.f32 %v2116_v43  ;;  %v1203_v63 = vpop.permute.xlu0 %1202 }
 0xb6b   :  { %2616 = vpow2.f32 %v2115_v44 }
 0xb6d   :  { %v1221_v13 = vpop.permute.xlu1 %1220 }
 0xb6e   :  { %v1219_v18 = vpop.permute.xlu0 %1218 }
 0xb70   :  { %v2611_v45 = vpop.eup %2610 }
 0xb71   :  { %v2613_v46 = vpop.eup %2612  ;;  %v1189_v47 = vadd.f32 1.0, %v2611_v45 }
 0xb72   :  { %v1188_v48 = vadd.f32 1.0, %v2613_v46 }
 0xb73   :  { %2618 = vrcp.f32 %v1189_v47 }
 0xb74   :  { %2620 = vrcp.f32 %v1188_v48  ;;  %v2615_v49 = vpop.eup %2614 }
 0xb75   :  { %v2617_v50 = vpop.eup %2616  ;;  %v1191_v55 = vadd.f32 1.0, %v2615_v49 }
 0xb76   :  { %v1190_v56 = vadd.f32 1.0, %v2617_v50 }
 0xb77   :  { %2622 = vrcp.f32 %v1191_v55 }
 0xb78   :  { %2624 = vrcp.f32 %v1190_v56 }
 0xb7d   :  { %v2619_v57 = vpop.eup %2618 }
 0xb7e   :  { %v2621_v61 = vpop.eup %2620  ;;  %v1209_v62 = vmul.f32 %v2619_v57, %v1205_v59 }
 0xb7f   :  { %v1208_v0 = vmul.f32 %v2621_v61, %v1203_v63 }
 0xb80   :  { %v1211_v4 = vadd.f32 %v1209_v62, %v2881_v29 }
 0xb81   :  { %v1210_v6 = vadd.f32 %v1208_v0, %v2884_v31  ;;  %v2623_v9 = vpop.eup %2622 }
 0xb82   :  { %2626 = vtanh.f32 %v1211_v4  ;;  %v2625_v10 = vpop.eup %2624  ;;  %v1215_v11 = vsub.f32 1.0, %v2623_v9  ;;  %v1225_v17 = vmul.f32 %v2623_v9, %v1221_v13 }
 0xb83   :  { %2628 = vtanh.f32 %v1210_v6  ;;  %v1214_v14 = vsub.f32 1.0, %v2625_v10  ;;  %v1224_v20 = vmul.f32 %v2625_v10, %v1219_v18 }
 0xb8c   :  { %v2627_v12 = vpop.eup %2626 }
 0xb8d   :  { %v2629_v15 = vpop.eup %2628  ;;  %v1217_v16 = vmul.f32 %v2627_v12, %v1215_v11 }
 0xb8e   :  { %v1216_v19 = vmul.f32 %v2629_v15, %v1214_v14 }
 0xb8f   :  { %v3001_v21 = vadd.f32 %v1225_v17, %v1217_v16 }
 0xb90   :  { %v1226_v22 = vadd.f32 %v1224_v20, %v1216_v19 }
 0xb92   :  { %v2506_v23 = vpack.i.bf16 %v3001_v21, %v1226_v22 }
 0xb94   :  { %2507 = vrot.lane.b32.xlu0 %v2506_v23, %s2713_s5 }
 0xc06   :  { %v2508_v24 = vpop.permute.xlu0 %2507 }
 0xc07   :  { %v2510_v25 = vunpack.i.h.bf16 %v2508_v24  ;;  %v2509_v27 = vunpack.i.l.bf16 %v2508_v24 }
 0xc09   :  { %v2439_v30 = vpack.c.bf16 %v2510_v25, %v2509_v27 }
 0xc0b   :  { %2440 = vmatprep.subr.bf16.mxu1 %v2439_v30 }
 0xc0c   :  { %2442 = vmatpush3.bf16.msra.mxu1 %v2439_v30 }
 0xc0f   :  { %2346 = vmatmul.mubr.msk.f32.vlgmr.msra.gmra.mrb[14].mxu1 %vm342_vm3, %v2787_v33 }
 0xc10   :  { %2348 = vmatprep.mubr.msk.f32.mxu1 %vm342_vm3, %v2807_v37 }
 0xc13   :  { %2349 = vmatmul.mubr.msk.f32.gmra.mrb[16].mxu1 %vm342_vm3, %v2802_v36 }
 0xc14   :  { %2351 = vmatprep.mubr.msk.f32.mxu1 %vm342_vm3, %v2825_v41 }
 0xc17   :  { %2352 = vmatmul.mubr.msk.f32.gmra.mrb[18].mxu1 %vm342_vm3, %v2820_v40 }
 0xc18   :  { %2371 = vmatprep.mubr.msk.f32.mxu1 %vm342_vm3, %v2782_v32 }
 0xce2   :  { %v2347_v34 = vpop.f32.mrb[14].mxu1 }
 0xce3   :  { %v1308_v35 = vadd.f32 %v2347_v34, %v2849_v51  ;;  %v1302_v38 = vpop.f32.mrb[15].mxu1 }
 0xce4   :  { %v1303_v33 = vadd.f32 %v1302_v38, %v2851_v52 }
 0xce5   :  { %1337 = vrot.lane.b32.xlu0 %v1308_v35, %s2714_s6 }
 0xce6   :  { %v2350_v37 = vpop.f32.mrb[16].mxu1  ;;  %1335 = vrot.lane.b32.xlu1 %v1303_v33, %s2714_s6 }
 0xce7   :  { %v1318_v36 = vadd.f32 %v2350_v37, %v2867_v5  ;;  %v1312_v39 = vpop.f32.mrb[17].mxu1 }
 0xce8   :  { %v1313_v41 = vadd.f32 %v1312_v39, %v2871_v8 }
 0xce9   :  { %1341 = vrot.lane.b32.xlu0 %v1318_v36, %s2714_s6 }
 0xcea   :  { %v2353_v40 = vpop.f32.mrb[18].mxu1  ;;  %1339 = vrot.lane.b32.xlu1 %v1313_v41, %s2714_s6 }
 0xceb   :  { %v1328_v32 = vadd.f32 %v2353_v40, %v2877_v26  ;;  %v1322_v42 = vpop.f32.mrb[19].mxu1 }
 0xcec   :  { %v1323_v43 = vadd.f32 %v1322_v42, %v2879_v28 }
 0xced   :  { %1379 = vrot.lane.b32.xlu0 %v1328_v32, %s2714_s6 }
 0xcee   :  { %1377 = vrot.lane.b32.xlu1 %v1323_v43, %s2714_s6 }
 0xcf1   :  { %1395 = vrot.lane.b32.xlu0 %v3001_v21, %s2708_s0 }
 0xcf2   :  { %1393 = vrot.lane.b32.xlu1 %v1226_v22, %s2708_s0 }
 0xd57   :  { %v1338_v44 = vpop.permute.xlu0 %1337 }
 0xd58   :  { %v1348_v45 = vadd.f32 %v1338_v44, %v2857_v58  ;;  %v1336_v46 = vpop.permute.xlu1 %1335  ;;  %v3037_v44 = vld [vmem:[%s3175_s1 + $0x58] sm:$0xff] }
 0xd59   :  { %v1347_v47 = vadd.f32 %v1336_v46, %v2859_v60  ;;  %v3051_v46 = vld [vmem:[%s3175_s1 + $0x68] sm:$0xff] }
 0xd5a   :  { %v2124_v48 = vmul.f32 -1.442695, %v1348_v45  ;;  %v3044_v45 = vld [vmem:[%s3175_s1 + $0x60] sm:$0xff] }
 0xd5b   :  { %v2123_v49 = vmul.f32 -1.442695, %v1347_v47  ;;  %v1342_v50 = vpop.permute.xlu0 %1341  ;;  %v3058_v47 = vld [vmem:[%s3175_s1 + $0x70] sm:$0xff] }
 0xd5c   :  { %2630 = vpow2.f32 %v2124_v48  ;;  %v1350_v55 = vadd.f32 %v1342_v50, %v2865_v3  ;;  %v1340_v56 = vpop.permute.xlu1 %1339  ;;  %v3065_v48 = vld [vmem:[%s3175_s1 + $0x78] sm:$0xff] }
 0xd5d   :  { %2632 = vpow2.f32 %v2123_v49  ;;  %v1349_v57 = vadd.f32 %v1340_v56, %v2869_v7 }
 0xd5e   :  { %v2126_v59 = vmul.f32 -1.442695, %v1350_v55 }
 0xd5f   :  { %v2125_v61 = vmul.f32 -1.442695, %v1349_v57  ;;  %v1380_v13 = vpop.permute.xlu0 %1379 }
 0xd60   :  { %2634 = vpow2.f32 %v2126_v59  ;;  %v1378_v16 = vpop.permute.xlu1 %1377 }
 0xd61   :  { %2636 = vpow2.f32 %v2125_v61 }
 0xd63   :  { %v1396_v25 = vpop.permute.xlu0 %1395 }
 0xd64   :  { %v1394_v38 = vpop.permute.xlu1 %1393 }
 0xd66   :  { %v2631_v62 = vpop.eup %2630 }
 0xd67   :  { %v2633_v63 = vpop.eup %2632  ;;  %v1364_v0 = vadd.f32 1.0, %v2631_v62 }
 0xd68   :  { %v1363_v4 = vadd.f32 1.0, %v2633_v63 }
 0xd69   :  { %2638 = vrcp.f32 %v1364_v0 }
 0xd6a   :  { %2640 = vrcp.f32 %v1363_v4  ;;  %v2635_v6 = vpop.eup %2634 }
 0xd6b   :  { %v2637_v9 = vpop.eup %2636  ;;  %v1366_v10 = vadd.f32 1.0, %v2635_v6 }
 0xd6c   :  { %v1365_v11 = vadd.f32 1.0, %v2637_v9 }
 0xd6d   :  { %2642 = vrcp.f32 %v1366_v10 }
 0xd6e   :  { %2644 = vrcp.f32 %v1365_v11 }
 0xd73   :  { %v2639_v12 = vpop.eup %2638 }
 0xd74   :  { %v2641_v14 = vpop.eup %2640  ;;  %v1384_v15 = vmul.f32 %v2639_v12, %v1380_v13 }
 0xd75   :  { %v1383_v17 = vmul.f32 %v2641_v14, %v1378_v16 }
 0xd76   :  { %v1386_v18 = vadd.f32 %v1384_v15, %v2881_v29 }
 0xd77   :  { %v1385_v19 = vadd.f32 %v1383_v17, %v2884_v31  ;;  %v2643_v20 = vpop.eup %2642 }
 0xd78   :  { %2646 = vtanh.f32 %v1386_v18  ;;  %v2645_v22 = vpop.eup %2644  ;;  %v1390_v23 = vsub.f32 1.0, %v2643_v20  ;;  %v1400_v35 = vmul.f32 %v2643_v20, %v1396_v25 }
 0xd79   :  { %2648 = vtanh.f32 %v1385_v19  ;;  %v1389_v27 = vsub.f32 1.0, %v2645_v22  ;;  %v1399_v37 = vmul.f32 %v2645_v22, %v1394_v38 }
 0xd82   :  { %v2647_v24 = vpop.eup %2646 }
 0xd83   :  { %v2649_v30 = vpop.eup %2648  ;;  %v1392_v34 = vmul.f32 %v2647_v24, %v1390_v23 }
 0xd84   :  { %v1391_v33 = vmul.f32 %v2649_v30, %v1389_v27 }
 0xd85   :  { %v1402_v36 = vadd.f32 %v1400_v35, %v1392_v34 }
 0xd86   :  { %v1401_v39 = vadd.f32 %v1399_v37, %v1391_v33 }
 0xd88   :  { %v2511_v41 = vpack.i.bf16 %v1402_v36, %v1401_v39 }
 0xd8a   :  { %2512 = vrot.lane.b32.xlu1 %v2511_v41, %s2715_s7 }
 0xdfc   :  { %v2513_v40 = vpop.permute.xlu1 %2512 }
 0xdfd   :  { %v2515_v32 = vunpack.i.h.bf16 %v2513_v40  ;;  %v2514_v42 = vunpack.i.l.bf16 %v2513_v40 }
 0xdff   :  { %v2443_v43 = vpack.c.bf16 %v2515_v32, %v2514_v42 }
 0xe01   :  { %2444 = vmatprep.subr.bf16.mxu0 %v2443_v43 }
 0xe02   :  { %2446 = vmatpush3.bf16.msra.mxu0 %v2443_v43 }
 0xe03   :  { %2451 = vmatprep.subr.bf16.mxu0 %v2697_v1 }
 0xe05   :  { %2359 = vmatmul.mubr.msk.f32.vlgmr.msra.gmra.mrb[22].mxu0 %vm342_vm3, %v3037_v44 }
 0xe06   :  { %2361 = vmatprep.mubr.msk.f32.mxu0 %vm342_vm3, %v3044_v45 }
 0xe09   :  { %2362 = vmatmul.mubr.msk.f32.gmra.mrb[24].mxu0 %vm342_vm3, %v3051_v46 }
 0xe0a   :  { %2364 = vmatprep.mubr.msk.f32.mxu0 %vm342_vm3, %v3058_v47 }
 0xe0d   :  { %2365 = vmatmul.mubr.msk.f32.gmra.mrb[26].mxu0 %vm342_vm3, %v3065_v48 }
 0xe0e   :  { %2384 = vmatprep.mubr.msk.f32.mxu0 %vm2698_vm0, %v2699_v2 }
 0xed8   :  { %v2360_v49 = vpop.f32.mrb[22].mxu0 }
 0xed9   :  { %v1483_v50 = vadd.f32 %v2360_v49, %v2849_v51  ;;  %v1477_v55 = vpop.f32.mrb[23].mxu0 }
 0xeda   :  { %v1478_v56 = vadd.f32 %v1477_v55, %v2851_v52 }
 0xedb   :  { %1512 = vrot.lane.b32.xlu1 %v1483_v50, %s2716_s20 }
 0xedc   :  { %v2363_v57 = vpop.f32.mrb[24].mxu0  ;;  %1510 = vrot.lane.b32.xlu0 %v1478_v56, %s2716_s20 }
 0xedd   :  { %v1493_v59 = vadd.f32 %v2363_v57, %v2867_v5  ;;  %v1487_v61 = vpop.f32.mrb[25].mxu0 }
 0xede   :  { %v1488_v62 = vadd.f32 %v1487_v61, %v2871_v8 }
 0xedf   :  { %1516 = vrot.lane.b32.xlu1 %v1493_v59, %s2716_s20 }
 0xee0   :  { %v2366_v63 = vpop.f32.mrb[26].mxu0  ;;  %1514 = vrot.lane.b32.xlu0 %v1488_v62, %s2716_s20 }
 0xee1   :  { %v1503_v0 = vadd.f32 %v2366_v63, %v2877_v26  ;;  %v1497_v4 = vpop.f32.mrb[27].mxu0 }
 0xee2   :  { %v1498_v6 = vadd.f32 %v1497_v4, %v2879_v28 }
 0xee3   :  { %1554 = vrot.lane.b32.xlu1 %v1503_v0, %s2716_s20 }
 0xee4   :  { %1552 = vrot.lane.b32.xlu0 %v1498_v6, %s2716_s20 }
 0xee7   :  { %1570 = vrot.lane.b32.xlu1 %v1402_v36, %s2708_s0 }
 0xee8   :  { %1568 = vrot.lane.b32.xlu0 %v1401_v39, %s2708_s0 }
 0xf4d   :  { %v1513_v9 = vpop.permute.xlu1 %1512 }
 0xf4e   :  { %v1523_v10 = vadd.f32 %v1513_v9, %v2857_v58  ;;  %v1511_v11 = vpop.permute.xlu0 %1510 }
 0xf4f   :  { %v1522_v12 = vadd.f32 %v1511_v11, %v2859_v60 }
 0xf50   :  { %v2134_v13 = vmul.f32 -1.442695, %v1523_v10 }
 0xf51   :  { %v2133_v14 = vmul.f32 -1.442695, %v1522_v12  ;;  %v1517_v15 = vpop.permute.xlu1 %1516 }
 0xf52   :  { %2650 = vpow2.f32 %v2134_v13  ;;  %v1525_v16 = vadd.f32 %v1517_v15, %v2865_v3  ;;  %v1515_v17 = vpop.permute.xlu0 %1514 }
 0xf53   :  { %2652 = vpow2.f32 %v2133_v14  ;;  %v1524_v18 = vadd.f32 %v1515_v17, %v2869_v7 }
 0xf54   :  { %v2136_v19 = vmul.f32 -1.442695, %v1525_v16 }
 0xf55   :  { %v2135_v20 = vmul.f32 -1.442695, %v1524_v18  ;;  %v1555_v33 = vpop.permute.xlu1 %1554 }
 0xf56   :  { %2654 = vpow2.f32 %v2136_v19  ;;  %v1553_v39 = vpop.permute.xlu0 %1552 }
 0xf57   :  { %2656 = vpow2.f32 %v2135_v20  ;;  %v1796_v20 = vld [vmem:[%s3175_s1 + $0x90] sm:$0xff] }
 0xf59   :  { %v1571_v55 = vpop.permute.xlu1 %1570 }
 0xf5a   :  { %v1569_v62 = vpop.permute.xlu0 %1568 }
 0xf5c   :  { %v2651_v22 = vpop.eup %2650 }
 0xf5d   :  { %v2653_v23 = vpop.eup %2652  ;;  %v1539_v24 = vadd.f32 1.0, %v2651_v22  ;;  %v1797_v22 = vld [vmem:[%s3175_s1 + $0x98] sm:$0x7f] }
 0xf5e   :  { %v1538_v25 = vadd.f32 1.0, %v2653_v23  ;;  %v2459_v23 = vpack.c.bf16 %v1797_v22, %v1796_v20 }
 0xf5f   :  { %2658 = vrcp.f32 %v1539_v24  ;;  %v3129_v24 = vld [vmem:[%s3175_s1 + $0xa0] sm:$0x7] }
 0xf60   :  { %2660 = vrcp.f32 %v1538_v25  ;;  %v2655_v27 = vpop.eup %2654 }
 0xf61   :  { %v2657_v30 = vpop.eup %2656  ;;  %v1541_v34 = vadd.f32 1.0, %v2655_v27 }
 0xf62   :  { %v1540_v35 = vadd.f32 1.0, %v2657_v30 }
 0xf63   :  { %2662 = vrcp.f32 %v1541_v34 }
 0xf64   :  { %2664 = vrcp.f32 %v1540_v35 }
 0xf69   :  { %v2659_v38 = vpop.eup %2658 }
 0xf6a   :  { %v2661_v37 = vpop.eup %2660  ;;  %v1559_v36 = vmul.f32 %v2659_v38, %v1555_v33 }
 0xf6b   :  { %v1558_v41 = vmul.f32 %v2661_v37, %v1553_v39 }
 0xf6c   :  { %v1561_v40 = vadd.f32 %v1559_v36, %v2881_v29 }
 0xf6d   :  { %v1560_v32 = vadd.f32 %v1558_v41, %v2884_v31  ;;  %v2663_v42 = vpop.eup %2662 }
 0xf6e   :  { %2666 = vtanh.f32 %v1561_v40  ;;  %v2665_v43 = vpop.eup %2664  ;;  %v1565_v49 = vsub.f32 1.0, %v2663_v42  ;;  %v1575_v61 = vmul.f32 %v2663_v42, %v1571_v55 }
 0xf6f   :  { %2668 = vtanh.f32 %v1560_v32  ;;  %v1564_v56 = vsub.f32 1.0, %v2665_v43  ;;  %v1574_v0 = vmul.f32 %v2665_v43, %v1569_v62 }
 0xf78   :  { %v2667_v50 = vpop.eup %2666 }
 0xf79   :  { %v2669_v57 = vpop.eup %2668  ;;  %v1567_v59 = vmul.f32 %v2667_v50, %v1565_v49 }
 0xf7a   :  { %v1566_v63 = vmul.f32 %v2669_v57, %v1564_v56 }
 0xf7b   :  { %v1577_v4 = vadd.f32 %v1575_v61, %v1567_v59 }
 0xf7c   :  { %v1576_v6 = vadd.f32 %v1574_v0, %v1566_v63 }
 0xf7e   :  { %v2516_v9 = vpack.i.bf16 %v1577_v4, %v1576_v6 }
 0xf80   :  { %2517 = vrot.lane.b32.xlu0 %v2516_v9, %s2717_s21  ;;  %v1754_v9 = vld [vmem:[%s3176_s2 + $0x8] sm:$0x3] }
 0xff2   :  { %v2518_v10 = vpop.permute.xlu0 %2517 }
 0xff3   :  { %v2520_v11 = vunpack.i.h.bf16 %v2518_v10  ;;  %v2519_v12 = vunpack.i.l.bf16 %v2518_v10  ;;  %v1756_v10 = vld [vmem:[%s3176_s2 + $0x18] sm:$0x3] }
 0xff5   :  { %v2447_v13 = vpack.c.bf16 %v2520_v11, %v2519_v12 }
 0xff7   :  { %2448 = vmatprep.subr.bf16.mxu1 %v2447_v13 }
 0xff8   :  { %2450 = vmatpush3.bf16.msra.mxu1 %v2447_v13  ;;  %v1758_v13 = vld [vmem:[%s3176_s2 + $0x28] sm:$0x3] }
 0xff9   :  { %2455 = vmatprep.subr.bf16.mxu1 %v2697_v1 }
 0xffb   :  { %2372 = vmatmul.mubr.msk.f32.vlgmr.msra.gmra.mrb[20].mxu1 %vm342_vm3, %v3037_v44 }
 0xffc   :  { %2374 = vmatprep.mubr.msk.f32.mxu1 %vm342_vm3, %v3044_v45 }
 0xfff   :  { %2375 = vmatmul.mubr.msk.f32.gmra.mrb[22].mxu1 %vm342_vm3, %v3051_v46 }
0x1000   :  { %2377 = vmatprep.mubr.msk.f32.mxu1 %vm342_vm3, %v3058_v47 }
0x1003   :  { %2378 = vmatmul.mubr.msk.f32.gmra.mrb[24].mxu1 %vm342_vm3, %v3065_v48 }
0x1004   :  { %2395 = vmatprep.mubr.msk.f32.mxu1 %vm2698_vm0, %v2699_v2 }
0x10ce   :  { %v2373_v14 = vpop.f32.mrb[20].mxu1 }
0x10cf   :  { %v1658_v15 = vadd.f32 %v2373_v14, %v2849_v51  ;;  %v1652_v16 = vpop.f32.mrb[21].mxu1  ;;  %v1755_v14 = vld [vmem:[%s3176_s2 + $0x10] sm:$0xff] }
0x10d0   :  { %v1653_v44 = vadd.f32 %v1652_v16, %v2851_v52  ;;  %v2695_v52 = vld [vmem:[%s3175_s1 + $0x18] sm:$0x3] }
0x10d1   :  { %1687 = vrot.lane.b32.xlu0 %v1658_v15, %s2718_s22 }
0x10d2   :  { %v2376_v45 = vpop.f32.mrb[22].mxu1  ;;  %1685 = vrot.lane.b32.xlu1 %v1653_v44, %s2718_s22 }
0x10d3   :  { %v1668_v46 = vadd.f32 %v2376_v45, %v2867_v5  ;;  %v1662_v17 = vpop.f32.mrb[23].mxu1  ;;  %v2696_v5 = vld [vmem:[%s3175_s1 + $0x10] sm:$0xff] }
0x10d4   :  { %v1663_v47 = vadd.f32 %v1662_v17, %v2871_v8  ;;  %v1794_v8 = vld [vmem:[%s3175_s1 + $0x80] sm:$0xff] }
0x10d5   :  { %1691 = vrot.lane.b32.xlu0 %v1668_v46, %s2718_s22 }
0x10d6   :  { %v2379_v48 = vpop.f32.mrb[24].mxu1  ;;  %1689 = vrot.lane.b32.xlu1 %v1663_v47, %s2718_s22 }
0x10d7   :  { %v1678_v18 = vadd.f32 %v2379_v48, %v2877_v26  ;;  %v1672_v19 = vpop.f32.mrb[25].mxu1  ;;  %v1795_v26 = vld [vmem:[%s3175_s1 + $0x88] sm:$0xff] }
0x10d8   :  { %v1673_v51 = vadd.f32 %v1672_v19, %v2879_v28  ;;  %v2456_v28 = vpack.c.bf16 %v1795_v26, %v1794_v8 }
0x10d9   :  { %1729 = vrot.lane.b32.xlu0 %v1678_v18, %s2718_s22 }
0x10da   :  { %1727 = vrot.lane.b32.xlu1 %v1673_v51, %s2718_s22  ;;  %2457 = vmatpush3.bf16.msra.mxu1 %v2456_v28 }
0x10db   :  { %2458 = vmatprep.subr.bf16.mxu1 %v2697_v1 }
0x10dd   :  { %1745 = vrot.lane.b32.xlu0 %v1577_v4, %s2708_s0 }
0x10de   :  { %1743 = vrot.lane.b32.xlu1 %v1576_v6, %s2708_s0  ;;  %2461 = vmatpush3.bf16.msk.msra.mxu1 %vm2460_vm6, %v2459_v23 }
0x10e1   :  { %214 = vperm.xlu0 %2522, %v2695_v52  }
0x10e2   :  { %209 = vperm.xlu1 %2521, %v2696_v5  }
0x10e5   :  { %1969 = vrot.lane.b32.xlu0 %v3129_v24, %s2715_s7 }
0x1143   :  { %v1688_v1 = vpop.permute.xlu0 %1687 }
0x1144   :  { %v1698_v25 = vadd.f32 %v1688_v1, %v2857_v58  ;;  %v1686_v27 = vpop.permute.xlu1 %1685 }
0x1145   :  { %v1697_v30 = vadd.f32 %v1686_v27, %v2859_v60 }
0x1146   :  { %v2144_v34 = vmul.f32 -1.442695, %v1698_v25 }
0x1147   :  { %v2143_v35 = vmul.f32 -1.442695, %v1697_v30  ;;  %v1692_v38 = vpop.permute.xlu0 %1691 }
0x1148   :  { %2670 = vpow2.f32 %v2144_v34  ;;  %v1700_v33 = vadd.f32 %v1692_v38, %v2865_v3  ;;  %v1690_v37 = vpop.permute.xlu1 %1689 }
0x1149   :  { %2672 = vpow2.f32 %v2143_v35  ;;  %v1699_v36 = vadd.f32 %v1690_v37, %v2869_v7 }
0x114a   :  { %v2146_v39 = vmul.f32 -1.442695, %v1700_v33 }
0x114b   :  { %v2145_v41 = vmul.f32 -1.442695, %v1699_v36  ;;  %v1730_v60 = vpop.permute.xlu0 %1729 }
0x114c   :  { %2674 = vpow2.f32 %v2146_v39  ;;  %v1728_v43 = vpop.permute.xlu1 %1727 }
0x114d   :  { %2676 = vpow2.f32 %v2145_v41 }
0x114f   :  { %v1746_v3 = vpop.permute.xlu0 %1745 }
0x1150   :  { %v1744_v57 = vpop.permute.xlu1 %1743 }
0x1152   :  { %v2671_v40 = vpop.eup %2670 }
0x1153   :  { %v2673_v32 = vpop.eup %2672  ;;  %v1714_v58 = vadd.f32 1.0, %v2671_v40 }
0x1154   :  { %v1713_v42 = vadd.f32 1.0, %v2673_v32 }
0x1155   :  { %2678 = vrcp.f32 %v1714_v58 }
0x1156   :  { %2680 = vrcp.f32 %v1713_v42  ;;  %v2675_v49 = vpop.eup %2674 }
0x1157   :  { %v2677_v50 = vpop.eup %2676  ;;  %v1716_v55 = vadd.f32 1.0, %v2675_v49 }
0x1158   :  { %v1715_v56 = vadd.f32 1.0, %v2677_v50 }
0x1159   :  { %2682 = vrcp.f32 %v1716_v55 }
0x115a   :  { %2684 = vrcp.f32 %v1715_v56 }
0x115f   :  { %v2679_v59 = vpop.eup %2678 }
0x1160   :  { %v2681_v7 = vpop.eup %2680  ;;  %v1734_v61 = vmul.f32 %v2679_v59, %v1730_v60  ;;  %v215_v62 = vpop.permute.xlu0 %214 }
0x1161   :  { %v1733_v63 = vmul.f32 %v2681_v7, %v1728_v43  ;;  %v293_v0 = vadd.f32 %v2853_v53, %v215_v62  ;;  %v210_v4 = vpop.permute.xlu1 %209 }
0x1162   :  { %v1736_v6 = vadd.f32 %v1734_v61, %v2881_v29  ;;  %v288_v11 = vadd.f32 %v2855_v54, %v210_v4  ;;  %v1753_v29 = vld [vmem:[%s3176_s2] sm:$0xff]  ;;  %v1968_v4 = vmax.f32 %v3001_v21, 0.0 }
0x1163   :  { %v1735_v12 = vadd.f32 %v1733_v63, %v2884_v31  ;;  %v297_v53 = vmax.f32 %v293_v0, 0.0  ;;  %v1757_v54 = vld [vmem:[%s3176_s2 + $0x20] sm:$0xff]  ;;  %v2683_v26 = vpop.eup %2682  ;;  %s2721_s2 = smov 114  }
0x1164   :  { %2686 = vtanh.f32 %v1736_v6  ;;  %v296_v31 = vmax.f32 %v288_v11, 0.0  ;;  %v2685_v20 = vpop.eup %2684  ;;  %v1740_v25 = vsub.f32 1.0, %v2683_v26  ;;  %v1750_v36 = vmul.f32 %v2683_v26, %v1746_v3 }
0x1165   :  { %2688 = vtanh.f32 %v1735_v12  ;;  %v1760_v15 = vmul.f32 %v1754_v9, %v297_v53  ;;  %v1762_v16 = vmul.f32 %v1756_v10, %v297_v53  ;;  %v1764_v44 = vmul.f32 %v1758_v13, %v297_v53 }
0x1166   :  { %v1759_v45 = vmul.f32 %v1753_v29, %v296_v31  ;;  %v1761_v46 = vmul.f32 %v1755_v14, %v296_v31  ;;  %v1763_v47 = vmul.f32 %v1757_v54, %v296_v31  ;;  %v1739_v35 = vsub.f32 1.0, %v2685_v20  ;;  %v1970_v29 = vpop.permute.xlu0 %1969 }
0x1167   :  { %v1768_v17 = vsel %vm1767_vm7, %v1760_v15, 0.0  ;;  %v1777_v48 = vsel %vm1767_vm7, %v1762_v16, 0.0  ;;  %v1786_v18 = vsel %vm1767_vm7, %v1764_v44, 0.0  ;;  %v1749_v32 = vmul.f32 %v2685_v20, %v1744_v57 }
0x1168   :  { %v1766_v19 = vsel %vm1765_vm8, %v1759_v45, 0.0  ;;  %v1776_v51 = vsel %vm1765_vm8, %v1761_v46, 0.0  ;;  %v1785_v8 = vsel %vm1765_vm8, %v1763_v47, 0.0  ;;  %v2720_v6 = vmov 15  }
0x1169   :  { %v1769_v52 = vadd.f32 %v1768_v17, %v1766_v19  ;;  %v1778_v5 = vadd.f32 %v1777_v48, %v1776_v51  ;;  %v1787_v28 = vadd.f32 %v1786_v18, %v1785_v8  ;;  %2528 = vset.pattern.permute.xlu1 %v2720_v6  ;;  %2529 = vset.pattern.permute.xlu0 %v2720_v6  ;;  %v1972_v10 = vrot.slane %v1968_v4, 2 }
0x116b   :  { %v1770_v22 = vrot.slane %v1769_v52, 4  ;;  %v1779_v23 = vrot.slane %v1778_v5, 4  ;;  %v1788_v1 = vrot.slane %v1787_v28, 4 }
0x116d   :  { %v1771_v27 = vadd.f32 %v1770_v22, %v1769_v52  ;;  %v1780_v30 = vadd.f32 %v1779_v23, %v1778_v5  ;;  %v1789_v38 = vadd.f32 %v1788_v1, %v1787_v28 }
0x116e   :  { %v2687_v34 = vpop.eup %2686 }
0x116f   :  { %v2689_v33 = vpop.eup %2688  ;;  %v1742_v37 = vmul.f32 %v2687_v34, %v1740_v25  ;;  %v1772_v39 = vrot.slane %v1771_v27, 2  ;;  %v1781_v41 = vrot.slane %v1780_v30, 2  ;;  %v1790_v58 = vrot.slane %v1789_v38, 2 }
0x1170   :  { %v1741_v40 = vmul.f32 %v2689_v33, %v1739_v35 }
0x1171   :  { %v1752_v42 = vadd.f32 %v1750_v36, %v1742_v37  ;;  %v1773_v60 = vadd.f32 %v1772_v39, %v1771_v27  ;;  %v1782_v43 = vadd.f32 %v1781_v41, %v1780_v30  ;;  %v1791_v50 = vadd.f32 %v1790_v58, %v1789_v38 }
0x1172   :  { %v1751_v49 = vadd.f32 %v1749_v32, %v1741_v40 }
0x1173   :  { %v1800_v55 = vmax.f32 %v1752_v42, 0.0  ;;  %v1774_v56 = vrot.slane %v1773_v60, 1  ;;  %v1783_v59 = vrot.slane %v1782_v43, 1  ;;  %v1792_v61 = vrot.slane %v1791_v50, 1 }
0x1174   :  { %v1799_v7 = vmax.f32 %v1751_v49, 0.0 }
0x1175   :  { %v1775_v62 = vadd.f32 %v1774_v56, %v1773_v60  ;;  %v1784_v63 = vadd.f32 %v1783_v59, %v1782_v43  ;;  %v1793_v0 = vadd.f32 %v1792_v61, %v1791_v50 }
0x1176   :  { %v2523_v3 = vpack.i.bf16 %v1800_v55, %v1799_v7 }
0x1177   :  { %v1889_v57 = vsel %vm1888_vm9, %v1784_v63, %v1775_v62 }
0x1178   :  { %2524 = vrot.lane.b32.xlu1 %v2523_v3, %s2721_s2  ;;  %v1891_v9 = vsel %vm1890_vm10, %v1793_v0, %v1889_v57 }
0x1179   :  { %2396 = vmatmul.mubr.msk.f32.vlgmr.msra.gmra.mrb[26].mxu1 %vm1765_vm8, %v1891_v9 }
0x117c   :  { %1973 = vrot.lane.b32.xlu1 %v1972_v10, %s2713_s5 }
0x1180   :  { %2053 = vperm.xlu1 %2528, %v3129_v24  }
0x11ea   :  { %v2525_v11 = vpop.permute.xlu1 %2524 }
0x11eb   :  { %v2527_v12 = vunpack.i.h.bf16 %v2525_v11  ;;  %v2526_v13 = vunpack.i.l.bf16 %v2525_v11 }
0x11ed   :  { %v2452_v21 = vpack.c.bf16 %v2527_v12, %v2526_v13 }
0x11ee   :  { %v1974_v53 = vpop.permute.xlu1 %1973 }
0x11ef   :  { %2454 = vmatpush3.bf16.msk.msra.mxu0 %vm2453_vm12, %v2452_v21 }
0x11f0   :  { %2398 = vmatprep.subr.mxu0 %v2699_v2 }
0x11f2   :  { %2385 = vmatmul.mubr.msk.f32.vlgmr.msra.gmra.mrb[28].mxu0 %vm1808_vm13, %v3129_v24 }
0x11f3   :  { %2399 = vmatpush3.msk.msra.mxu0 %vm1978_vm14, %v1974_v53  ;;  %2400 = vmatprep.mubr.msk.f32.mxu0 %vm2698_vm0, %v2699_v2 }
0x11f6   :  { %2401 = vmatmul.mubr.msk.f32.vlgmr.msra.gmra.mrb[30].mxu0 %vm1975_vm15, %v1970_v29 }
0x11ff   :  { %v2054_v45 = vpop.permute.xlu1 %2053 }
0x124c   :  { %v1964_v14 = vpop.f32.mrb[26].mxu1 }
0x124d   :  { %v2397_v54 = vpop.f32.mrb[27].mxu1 }
0x12c5   :  { %v1881_v31 = vpop.f32.mrb[28].mxu0 }
0x12c6   :  { %v1965_v15 = vadd.f32 %v1964_v14, %v1881_v31  ;;  %v2386_v16 = vpop.f32.mrb[29].mxu0 }
0x12c9   :  { %v2047_v44 = vpop.f32.mrb[30].mxu0 }
0x12ca   :  { %v2051_v46 = vadd.f32 %v2047_v44, %v1965_v15  ;;  %v2402_v17 = vpop.f32.mrb[31].mxu0 }
0x12cc   :  { %v2056_v47 = vadd.f32 %v2054_v45, %v2051_v46 }
0x12ce   :  { %2058 = vst.msk [vmem:[%s3177_s3] sm:$0x7] %vm2057_vm1, %v2056_v47 }

</bundles_post_ra>
